<compile_context>
chip_gen: v7x
topology: tpu7x:2x2x1
jax: 0.10.0
libtpu: 0.0.40
codegen_flags: <defaults>
</compile_context>

<pallas_src>
import functools

import jax
import jax.numpy as jnp
from jax.experimental import pallas as pl
from jax.experimental.pallas import tpu as pltpu


def _vmem_capacity_bytes():
    try:
        info = pltpu.get_tpu_info()
        return int(getattr(info, "vmem_capacity_bytes"))
    except Exception:
        return 64 * 1024 * 1024  # conservative fallback (v7x per-TC size)


_MB = 1024 * 1024
_VMEM_PHYS = _vmem_capacity_bytes()
# Leave >= 16 MiB headroom (v7x: 48 MiB); cap at 100 MiB on 128 MiB parts.
_VMEM_LIMIT = int(min(100 * _MB, max(_VMEM_PHYS - 16 * _MB, 32 * _MB)))
_BIG_VMEM = _VMEM_PHYS >= 96 * _MB

# Tile targets (upper bounds; _pick_tile shrinks them to fit small problems).
_LIN_TM = 512 if _BIG_VMEM else 256
_LIN_TN = 512
_LIN_TK = 2048 if _BIG_VMEM else 1024
_MLP_TM = 256
_MLP_TI = 1024 if _BIG_VMEM else 256
_ATTN_TQ = 512 if _BIG_VMEM else 256
_ATTN_TKV = 1024 if _BIG_VMEM else 512
_NORM_TM = 512 if _BIG_VMEM else 256


def _pick_tile(dim, target, base):
    """Largest tile <= target that divides `dim` and is a multiple of `base`
    (falls back to the full dim when dim <= target or no divisor exists)."""
    if dim <= target:
        return dim
    t = (target // base) * base
    while t >= base:
        if dim % t == 0:
            return t
        t -= base
    return dim


# ---------------------------------------------------------------------------
# Pallas kernels
# ---------------------------------------------------------------------------

def _linear_kernel(x_ref, w_ref, o_ref, acc_ref):
    # o = x @ w with w pre-transposed to (in, out) and stored bf16; f32 accumulate.
    k = pl.program_id(2)

    @pl.when(k == 0)
    def _():
        acc_ref[...] = jnp.zeros_like(acc_ref)

    acc_ref[...] += jnp.dot(x_ref[...].astype(jnp.bfloat16), w_ref[...],
                            preferred_element_type=jnp.float32)

    @pl.when(k == pl.num_programs(2) - 1)
    def _():
        o_ref[...] = acc_ref[...].astype(o_ref.dtype)


def pallas_linear(x2d, w_t, *, tm=None, tn=None, tk=None):
    M, K = x2d.shape
    K2, N = w_t.shape
    assert K == K2
    tm = _pick_tile(M, tm or _LIN_TM, 8)
    tn = _pick_tile(N, tn or _LIN_TN, 128)
    tk = _pick_tile(K, tk or _LIN_TK, 128)
    return pl.pallas_call(
        _linear_kernel,
        out_shape=jax.ShapeDtypeStruct((M, N), x2d.dtype),
        grid=(M // tm, N // tn, K // tk),
        in_specs=[pl.BlockSpec((tm, tk), lambda i, j, k: (i, k)),
                  pl.BlockSpec((tk, tn), lambda i, j, k: (k, j))],
        out_specs=pl.BlockSpec((tm, tn), lambda i, j, k: (i, j)),
        scratch_shapes=[pltpu.VMEM((tm, tn), jnp.float32)],
        compiler_params=pltpu.CompilerParams(
            dimension_semantics=("parallel", "parallel", "arbitrary"),
            vmem_limit_bytes=_VMEM_LIMIT),
    )(x2d, w_t)


def _rmsnorm_kernel(x_ref, w_ref, o_ref, *, eps):
    # RMSNorm with add_unit_offset=True: x * rsqrt(mean(x^2) + eps) * (1 + w)
    x = x_ref[...].astype(jnp.float32)
    var = jnp.mean(x * x, axis=-1, keepdims=True)
    nx = x * jax.lax.rsqrt(var + eps)
    o_ref[...] = (nx * (1.0 + w_ref[...])).astype(o_ref.dtype)


def pallas_rmsnorm(x2d, w, eps, *, tm=None):
    M, D = x2d.shape
    tm = _pick_tile(M, tm or _NORM_TM, 8)
    w2d = w.reshape(1, D)
    return pl.pallas_call(
        functools.partial(_rmsnorm_kernel, eps=eps),
        out_shape=jax.ShapeDtypeStruct((M, D), x2d.dtype),
        grid=(M // tm,),
        in_specs=[pl.BlockSpec((tm, D), lambda i: (i, 0)),
                  pl.BlockSpec((1, D), lambda i: (0, 0))],
        out_specs=pl.BlockSpec((tm, D), lambda i: (i, 0)),
        compiler_params=pltpu.CompilerParams(
            dimension_semantics=("parallel",),
            vmem_limit_bytes=_VMEM_LIMIT),
    )(x2d, w2d)


def _add_rmsnorm_kernel(r_ref, d_ref, w_ref, h_ref, o_ref, *, eps):
    # Fused residual add + RMSNorm: h = r + d; o = rmsnorm(h) * (1 + w).
    h = r_ref[...] + d_ref[...]
    h_ref[...] = h
    x = h.astype(jnp.float32)
    var = jnp.mean(x * x, axis=-1, keepdims=True)
    nx = x * jax.lax.rsqrt(var + eps)
    o_ref[...] = (nx * (1.0 + w_ref[...])).astype(o_ref.dtype)


def pallas_add_rmsnorm(r2d, d2d, w, eps, *, tm=None):
    M, D = r2d.shape
    tm = _pick_tile(M, tm or _NORM_TM, 8)
    w2d = w.reshape(1, D)
    return pl.pallas_call(
        functools.partial(_add_rmsnorm_kernel, eps=eps),
        out_shape=(jax.ShapeDtypeStruct((M, D), r2d.dtype),
                   jax.ShapeDtypeStruct((M, D), r2d.dtype)),
        grid=(M // tm,),
        in_specs=[pl.BlockSpec((tm, D), lambda i: (i, 0)),
                  pl.BlockSpec((tm, D), lambda i: (i, 0)),
                  pl.BlockSpec((1, D), lambda i: (0, 0))],
        out_specs=(pl.BlockSpec((tm, D), lambda i: (i, 0)),
                   pl.BlockSpec((tm, D), lambda i: (i, 0))),
        compiler_params=pltpu.CompilerParams(
            dimension_semantics=("parallel",),
            vmem_limit_bytes=_VMEM_LIMIT),
    )(r2d, d2d, w2d)


def _erf_approx(x):
    # Abramowitz & Stegun 7.1.26 rational approximation (|err| < 1.5e-7),
    # VPU mul/add + one EUP exp + one EUP approx-reciprocal — matches F.gelu's
    # exact (erf) form without relying on a lax.erf lowering inside Mosaic.
    a1, a2, a3, a4, a5 = (0.254829592, -0.284496736, 1.421413741,
                          -1.453152027, 1.061405429)
    p = 0.3275911
    ax = jnp.abs(x)
    t = pl.reciprocal(1.0 + p * ax, approx=True)
    poly = ((((a5 * t + a4) * t + a3) * t + a2) * t + a1) * t
    y = 1.0 - poly * jnp.exp(-ax * ax)
    return jnp.where(x >= 0, y, -y)


def _gelu_exact(x):
    return 0.5 * x * (1.0 + _erf_approx(x * 0.7071067811865476))


def _mlp_kernel(x_ref, wg_ref, wu_ref, wd_ref, o_ref, acc_ref):
    # Fused Gemma MLP tile: gate/up matmuls (bf16 MXU), exact GELU, elementwise
    # fuse, and the down-projection accumulation — the (tm, ti) intermediate
    # never leaves VMEM.
    j = pl.program_id(1)

    @pl.when(j == 0)
    def _():
        acc_ref[...] = jnp.zeros_like(acc_ref)

    x = x_ref[...].astype(jnp.bfloat16)
    gate = jnp.dot(x, wg_ref[...], preferred_element_type=jnp.float32)
    up = jnp.dot(x, wu_ref[...], preferred_element_type=jnp.float32)
    fuse = _gelu_exact(gate) * up
    acc_ref[...] += jnp.dot(fuse.astype(jnp.bfloat16), wd_ref[...],
                            preferred_element_type=jnp.float32)

    @pl.when(j == pl.num_programs(1) - 1)
    def _():
        o_ref[...] = acc_ref[...].astype(o_ref.dtype)


def pallas_mlp(x2d, wg_t, wu_t, wd_t, *, tm=None, ti=None):
    # TODO(synk): a single concatenated gate|up dot per tile would save one DMA
    # stream and one MXU launch, but requires a ti-granular weight interleave.
    M, D = x2d.shape
    I = wg_t.shape[1]
    tm = _pick_tile(M, tm or _MLP_TM, 8)
    ti = _pick_tile(I, ti or _MLP_TI, 128)
    return pl.pallas_call(
        _mlp_kernel,
        out_shape=jax.ShapeDtypeStruct((M, D), x2d.dtype),
        grid=(M // tm, I // ti),
        in_specs=[pl.BlockSpec((tm, D), lambda i, j: (i, 0)),
                  pl.BlockSpec((D, ti), lambda i, j: (0, j)),
                  pl.BlockSpec((D, ti), lambda i, j: (0, j)),
                  pl.BlockSpec((ti, D), lambda i, j: (j, 0))],
        out_specs=pl.BlockSpec((tm, D), lambda i, j: (i, 0)),
        scratch_shapes=[pltpu.VMEM((tm, D), jnp.float32)],
        compiler_params=pltpu.CompilerParams(
            dimension_semantics=("parallel", "arbitrary"),
            vmem_limit_bytes=_VMEM_LIMIT),
    )(x2d, wg_t, wu_t, wd_t)


_MASK_VALUE = -1e30  # large finite negative; exp underflows to 0, never NaN


def _flash_attn_kernel(qmax_ref, q_ref, k_ref, v_ref, pos_ref, o_ref,
                       m_sc, l_sc, acc_sc):
    # One (batch, kv-head, q-tile) slab vs one KV tile; online softmax along kv.
    # The causal mask is generated in-kernel from per-row query positions; the
    # scalar-prefetched per-q-tile max position skips all-future KV tiles.
    qi = pl.program_id(2)
    kv = pl.program_id(3)
    tkv = k_ref.shape[0]

    @pl.when(kv == 0)
    def _():
        m_sc[...] = jnp.full_like(m_sc, -jnp.inf)
        l_sc[...] = jnp.zeros_like(l_sc)
        acc_sc[...] = jnp.zeros_like(acc_sc)

    @pl.when(kv * tkv <= qmax_ref[qi])
    def _():
        q = q_ref[...].astype(jnp.bfloat16)          # scale already folded in
        k = k_ref[...].astype(jnp.bfloat16)
        s = jax.lax.dot_general(q, k, (((1,), (1,)), ((), ())),
                                preferred_element_type=jnp.float32)
        kv_idx = kv * tkv + jax.lax.broadcasted_iota(jnp.int32, s.shape, 1)
        s = jnp.where(kv_idx <= pos_ref[...], s, _MASK_VALUE)

        m_prev = m_sc[...]
        m_new = jnp.maximum(m_prev, jnp.max(s, axis=-1, keepdims=True))
        alpha = jnp.exp(m_prev - m_new)
        p = jnp.exp(s - m_new)
        l_sc[...] = alpha * l_sc[...] + jnp.sum(p, axis=-1, keepdims=True)
        acc_sc[...] = alpha * acc_sc[...] + jnp.dot(
            p.astype(jnp.bfloat16), v_ref[...].astype(jnp.bfloat16),
            preferred_element_type=jnp.float32)
        m_sc[...] = m_new

    @pl.when(kv == pl.num_programs(3) - 1)
    def _():
        o_ref[...] = (acc_sc[...] *
                      pl.reciprocal(l_sc[...], approx=True)).astype(o_ref.dtype)


def pallas_flash_attention(q, k, v, kv_write_indices, *, tq=None, tkv=None):
    # q: (B, KVH, G, Dh) with G = rep*S (query heads of each KV group stacked
    #    into the row dim), pre-scaled by head_dim**-0.5.
    # k, v: (B, KVH, T, Dh) — the cache in its native layout, never repeated.
    # kv_write_indices: (S,) int32 query positions (causal mask built in-kernel).
    # TODO(synk): arbitrary (non-causal) additive masks would need the streamed
    # mask-tile path; the Gemma generation loop only ever uses this causal form.
    B, KVH, G, Dh = q.shape
    T = k.shape[2]
    S = kv_write_indices.shape[0]
    rep = G // S
    tq = _pick_tile(G, tq or _ATTN_TQ, 8)
    tkv = _pick_tile(T, tkv or _ATTN_TKV, 128)
    nq, nkv = G // tq, T // tkv

    pos = jnp.tile(kv_write_indices.astype(jnp.int32), rep)      # (G,)
    pos2d = pos.reshape(G, 1)
    qmax = jnp.max(pos.reshape(nq, tq), axis=1).astype(jnp.int32)  # (nq,)

    return pl.pallas_call(
        _flash_attn_kernel,
        out_shape=jax.ShapeDtypeStruct((B, KVH, G, Dh), q.dtype),
        grid_spec=pltpu.PrefetchScalarGridSpec(
            num_scalar_prefetch=1,
            grid=(B, KVH, nq, nkv),
            in_specs=[
                pl.BlockSpec((None, None, tq, Dh),
                             lambda b, g, qi, kv, qmax: (b, g, qi, 0)),
                pl.BlockSpec((None, None, tkv, Dh),
                             lambda b, g, qi, kv, qmax: (b, g, kv, 0)),
                pl.BlockSpec((None, None, tkv, Dh),
                             lambda b, g, qi, kv, qmax: (b, g, kv, 0)),
                pl.BlockSpec((tq, 1),
                             lambda b, g, qi, kv, qmax: (qi, 0)),
            ],
            out_specs=pl.BlockSpec((None, None, tq, Dh),
                                   lambda b, g, qi, kv, qmax: (b, g, qi, 0)),
            scratch_shapes=[pltpu.VMEM((tq, 1), jnp.float32),    # running max
                            pltpu.VMEM((tq, 1), jnp.float32),    # running sum
                            pltpu.VMEM((tq, Dh), jnp.float32)]), # accumulator
        compiler_params=pltpu.CompilerParams(
            dimension_semantics=("parallel", "parallel", "parallel", "arbitrary"),
            vmem_limit_bytes=_VMEM_LIMIT),
    )(qmax, q, k, v, pos2d)


# ---------------------------------------------------------------------------
# Plain-JAX glue matching the PyTorch module semantics
# ---------------------------------------------------------------------------

def apply_rotary_emb(x, cos, sin):
    # x: (B, S, nH, Dh); cos/sin: (S, Dh//2).  Matches the torch complex-mul
    # formulation: out[..., :Dh/2] = x1*cos - x2*sin, out[..., Dh/2:] = x1*sin + x2*cos
    Dh = x.shape[-1]
    x1 = x[..., : Dh // 2]
    x2 = x[..., Dh // 2:]
    c = cos[None, :, None, :]
    s = sin[None, :, None, :]
    out1 = x1 * c - x2 * s
    out2 = x1 * s + x2 * c
    return jnp.concatenate([out1, out2], axis=-1).astype(x.dtype)


def gemma_attention(x, layer_p, freqs_cos, freqs_sin, kv_write_indices,
                    k_cache, v_cache, cfg):
    B, S, D = x.shape
    H, KVH, Dh = cfg["num_heads"], cfg["num_kv_heads"], cfg["head_dim"]
    rep = H // KVH
    q_size, kv_size = H * Dh, KVH * Dh

    qkv = pallas_linear(x.reshape(B * S, D), layer_p["qkv_w_t"]).reshape(B, S, -1)
    xq = qkv[..., :q_size].reshape(B, S, H, Dh)
    xk = qkv[..., q_size:q_size + kv_size].reshape(B, S, KVH, Dh)
    xv = qkv[..., q_size + kv_size:].reshape(B, S, KVH, Dh)

    xq = apply_rotary_emb(xq, freqs_cos, freqs_sin)
    xk = apply_rotary_emb(xk, freqs_cos, freqs_sin)

    # Cache stored natively as (B, KVH, T, Dh); scatter only the S new tokens
    # along axis 2 (in place via jit donation of the caches).
    k_cache = k_cache.at[:, :, kv_write_indices, :].set(jnp.transpose(xk, (0, 2, 1, 3)))
    v_cache = v_cache.at[:, :, kv_write_indices, :].set(jnp.transpose(xv, (0, 2, 1, 3)))

    scale = Dh ** (-0.5)
    # Stack the `rep` query heads of each KV group into the row dim so one grid
    # step per KV head reuses a single K/V DMA for all rep query heads.
    q = (jnp.transpose(xq, (0, 2, 1, 3)) * scale).reshape(B, KVH, rep * S, Dh)

    attn = pallas_flash_attention(q, k_cache, v_cache, kv_write_indices)
    attn = attn.reshape(B, KVH, rep, S, Dh)
    attn = jnp.transpose(attn, (0, 3, 1, 2, 4)).reshape(B * S, H * Dh)
    out2d = pallas_linear(attn, layer_p["o_w_t"])
    return out2d, k_cache, v_cache


def gemma_model_forward(hidden_states, freqs_cos, freqs_sin, kv_write_indices,
                        kv_caches, params, cfg):
    """Residual adds are fused into the following RMSNorm kernel: each layer's
    input norm also performs the previous sub-layer's residual add."""
    B, S, D = hidden_states.shape
    eps = cfg["rms_norm_eps"]
    new_caches = []

    h2d = hidden_states.reshape(B * S, D)   # running residual
    delta2d = None                          # pending sub-layer output to add

    for i, layer_p in enumerate(params["layers"]):
        k_cache, v_cache = kv_caches[i]

        if delta2d is None:
            x2d = pallas_rmsnorm(h2d, layer_p["input_ln"], eps)
        else:
            h2d, x2d = pallas_add_rmsnorm(h2d, delta2d, layer_p["input_ln"], eps)

        attn2d, k_cache, v_cache = gemma_attention(
            x2d.reshape(B, S, D), layer_p, freqs_cos, freqs_sin,
            kv_write_indices, k_cache, v_cache, cfg)

        h2d, x2d = pallas_add_rmsnorm(h2d, attn2d, layer_p["post_ln"], eps)
        delta2d = pallas_mlp(x2d, layer_p["gate_w_t"], layer_p["up_w_t"],
                             layer_p["down_w_t"])
        new_caches.append((k_cache, v_cache))

    if delta2d is None:
        out2d = pallas_rmsnorm(h2d, params["final_norm"], eps)
    else:
        _, out2d = pallas_add_rmsnorm(h2d, delta2d, params["final_norm"], eps)
    return out2d.reshape(B, S, D), new_caches


# ---------------------------------------------------------------------------
# Deterministic synthetic parameter init (quant=False path)
# ---------------------------------------------------------------------------

def init_params(key, cfg):
    """Weights in PyTorch Linear layout (out_features, in_features), f32."""
    D = cfg["hidden_size"]
    H, KVH, Dh = cfg["num_heads"], cfg["num_kv_heads"], cfg["head_dim"]
    I = cfg["intermediate_size"]
    layers = []
    for _ in range(cfg["num_layers"]):
        key, *ks = jax.random.split(key, 8)
        layers.append(dict(
            qkv_w=jax.random.normal(ks[0], ((H + 2 * KVH) * Dh, D), jnp.float32) * 0.05,
            o_w=jax.random.normal(ks[1], (D, H * Dh), jnp.float32) * 0.05,
            gate_w=jax.random.normal(ks[2], (I, D), jnp.float32) * 0.05,
            up_w=jax.random.normal(ks[3], (I, D), jnp.float32) * 0.05,
            down_w=jax.random.normal(ks[4], (D, I), jnp.float32) * 0.05,
            input_ln=jax.random.normal(ks[5], (D,), jnp.float32) * 0.1,
            post_ln=jax.random.normal(ks[6], (D,), jnp.float32) * 0.1,
        ))
    key, k_norm = jax.random.split(key)
    return dict(layers=layers,
                final_norm=jax.random.normal(k_norm, (D,), jnp.float32) * 0.1)


def prepare_params(params):
    """One-time load-time transform: transpose Linear weights to
    (in_features, out_features) for lane-dense outputs and cast them to bf16
    so the MXU runs on its native dtype (f32 accumulation kept in-kernel)."""
    bf = jnp.bfloat16
    layers = []
    for p in params["layers"]:
        layers.append(dict(
            qkv_w_t=p["qkv_w"].T.astype(bf),
            o_w_t=p["o_w"].T.astype(bf),
            gate_w_t=p["gate_w"].T.astype(bf),
            up_w_t=p["up_w"].T.astype(bf),
            down_w_t=p["down_w"].T.astype(bf),
            input_ln=p["input_ln"],
            post_ln=p["post_ln"],
        ))
    return dict(layers=layers, final_norm=params["final_norm"])


if __name__ == "__main__":
    cfg = dict(hidden_size=32, num_heads=4, num_kv_heads=2, head_dim=16,
               intermediate_size=64, num_layers=2, max_seq_len=16,
               rms_norm_eps=1e-6)
    B, S = 2, 8
    T = cfg["max_seq_len"]
    Dh = cfg["head_dim"]
    KVH = cfg["num_kv_heads"]

    key = jax.random.PRNGKey(0)
    key, kh = jax.random.split(key)
    params = prepare_params(init_params(key, cfg))
    hidden = jax.random.normal(kh, (B, S, cfg["hidden_size"]), jnp.float32)

    # Rotary frequencies for positions 0..S-1 (freqs_cis as cos/sin pair).
    positions = jnp.arange(S, dtype=jnp.float32)
    inv_freq = 1.0 / (10000.0 ** (jnp.arange(0, Dh, 2, dtype=jnp.float32) / Dh))
    angles = positions[:, None] * inv_freq[None, :]          # (S, Dh//2)
    freqs_cos, freqs_sin = jnp.cos(angles), jnp.sin(angles)

    kv_write_indices = jnp.arange(S, dtype=jnp.int32)
    # KV caches in native attention layout (B, KVH, T, Dh).
    kv_caches = [
        (jnp.zeros((B, KVH, T, Dh), jnp.float32),
         jnp.zeros((B, KVH, T, Dh), jnp.float32))
        for _ in range(cfg["num_layers"])
    ]

    def forward_fn(hidden_states, f_cos, f_sin, kv_idx, caches, prm):
        return gemma_model_forward(hidden_states, f_cos, f_sin, kv_idx,
                                   caches, prm, cfg)

    # Donate kv caches so the scatter update happens in place (returned updated).
    fwd = jax.jit(forward_fn, donate_argnums=(4,))
    out, kv_caches = fwd(hidden, freqs_cos, freqs_sin, kv_write_indices,
                         kv_caches, params)
    out = jax.block_until_ready(out)
    assert out.shape == (B, S, cfg["hidden_size"])
    assert bool(jnp.all(jnp.isfinite(out)))
    print("KERNEL_OK")
</pallas_src>

<mosaic_0001>
module attributes {stable_mosaic.version = 11 : i64} {
  func.func @_rmsnorm_kernel(%arg0: i32, %arg1: memref<16x32xf32, #tpu.memory_space<vmem>>, %arg2: memref<1x32xf32, #tpu.memory_space<vmem>>, %arg3: memref<16x32xf32, #tpu.memory_space<vmem>>) attributes {dimension_semantics = [#tpu.dimension_semantics<parallel>], iteration_bounds = array<i64: 1>, scalar_prefetch = 0 : i64, scratch_operands = 0 : i64, tpu.core_type = #tpu.core_type<tc>, window_params = [{transform_indices = @transform_0, window_bounds = array<i64: 16, 32>}, {pipeline_mode = #tpu.pipeline_mode<synchronous>, transform_indices = @transform_1, window_bounds = array<i64: 1, 32>}, {transform_indices = @transform_2, window_bounds = array<i64: 16, 32>}]} {
    %c0 = arith.constant 0 : index
    %c0_0 = arith.constant 0 : index
    %0 = vector.load %arg1[%c0, %c0_0] : memref<16x32xf32, #tpu.memory_space<vmem>>, vector<16x32xf32>
    %1 = arith.mulf %0, %0 : vector<16x32xf32>
    %cst = arith.constant dense<0.000000e+00> : vector<16xf32>
    %2 = vector.multi_reduction <add>, %1, %cst [1] : vector<16x32xf32> to vector<16xf32>
    %3 = vector.shape_cast %2 : vector<16xf32> to vector<16x1xf32>
    %cst_1 = arith.constant 3.200000e+01 : f32
    %4 = vector.broadcast %cst_1 : f32 to vector<16x1xf32>
    %5 = arith.divf %3, %4 : vector<16x1xf32>
    %cst_2 = arith.constant 9.99999997E-7 : f32
    %6 = vector.broadcast %cst_2 : f32 to vector<16x1xf32>
    %7 = arith.addf %5, %6 : vector<16x1xf32>
    %8 = math.rsqrt %7 : vector<16x1xf32>
    %9 = vector.broadcast %8 : vector<16x1xf32> to vector<16x32xf32>
    %10 = arith.mulf %0, %9 : vector<16x32xf32>
    %c0_3 = arith.constant 0 : index
    %c0_4 = arith.constant 0 : index
    %11 = vector.load %arg2[%c0_3, %c0_4] : memref<1x32xf32, #tpu.memory_space<vmem>>, vector<1x32xf32>
    %cst_5 = arith.constant 1.000000e+00 : f32
    %12 = vector.broadcast %cst_5 : f32 to vector<1x32xf32>
    %13 = arith.addf %12, %11 : vector<1x32xf32>
    %14 = vector.broadcast %13 : vector<1x32xf32> to vector<16x32xf32>
    %15 = arith.mulf %10, %14 : vector<16x32xf32>
    %c0_6 = arith.constant 0 : index
    %c0_7 = arith.constant 0 : index
    %16 = vector.load %arg3[%c0_6, %c0_7] : memref<16x32xf32, #tpu.memory_space<vmem>>, vector<16x32xf32>
    tpu.vector_store %arg3[%c0_6, %c0_7], %15 {strides = array<i32>} : memref<16x32xf32, #tpu.memory_space<vmem>>, vector<16x32xf32>,
    return
  }
  func.func @transform_0(%arg0: i32) -> (i32, i32) {
    %c0_i32 = arith.constant 0 : i32
    %c0_i32_0 = arith.constant 0 : i32
    return %arg0, %c0_i32 : i32, i32
  }
  func.func @transform_1(%arg0: i32) -> (i32, i32) {
    %c0_i32 = arith.constant 0 : i32
    %c0_i32_0 = arith.constant 0 : i32
    %c0_i32_1 = arith.constant 0 : i32
    return %c0_i32, %c0_i32_0 : i32, i32
  }
  func.func @transform_2(%arg0: i32) -> (i32, i32) {
    %c0_i32 = arith.constant 0 : i32
    %c0_i32_0 = arith.constant 0 : i32
    return %arg0, %c0_i32 : i32, i32
  }
}

module attributes {stable_mosaic.version = 11 : i64} {
  func.func @_linear_kernel(%arg0: i32, %arg1: i32, %arg2: i32, %arg3: memref<16x32xf32, #tpu.memory_space<vmem>>, %arg4: memref<32x128xbf16, #tpu.memory_space<vmem>>, %arg5: memref<16x128xf32, #tpu.memory_space<vmem>>, %arg6: memref<16x128xf32, #tpu.memory_space<vmem>>) attributes {dimension_semantics = [#tpu.dimension_semantics<parallel>, #tpu.dimension_semantics<parallel>, #tpu.dimension_semantics<arbitrary>], iteration_bounds = array<i64: 1, 1, 1>, scalar_prefetch = 0 : i64, scratch_operands = 1 : i64, tpu.core_type = #tpu.core_type<tc>, window_params = [{transform_indices = @transform_0, window_bounds = array<i64: 16, 32>}, {transform_indices = @transform_1, window_bounds = array<i64: 32, 128>}, {transform_indices = @transform_2, window_bounds = array<i64: 16, 128>}]} {
    %c0_i32 = arith.constant 0 : i32
    %0 = arith.cmpi eq, %arg2, %c0_i32 : i32
    %1 = arith.extui %0 : i1 to i32
    %c0_i32_0 = arith.constant 0 : i32
    %2 = arith.cmpi ne, %1, %c0_i32_0 : i32
    scf.if %2 {
      %cst_10 = arith.constant 0.000000e+00 : f32
      %13 = vector.broadcast %cst_10 : f32 to vector<16x128xf32>
      %c0_11 = arith.constant 0 : index
      %c0_12 = arith.constant 0 : index
      %14 = vector.load %arg6[%c0_11, %c0_12] : memref<16x128xf32, #tpu.memory_space<vmem>>, vector<16x128xf32>
      tpu.vector_store %arg6[%c0_11, %c0_12], %13 {strides = array<i32>} : memref<16x128xf32, #tpu.memory_space<vmem>>, vector<16x128xf32>,
    } else {
    }
    %c0 = arith.constant 0 : index
    %c0_1 = arith.constant 0 : index
    %3 = vector.load %arg6[%c0, %c0_1] : memref<16x128xf32, #tpu.memory_space<vmem>>, vector<16x128xf32>
    %c0_2 = arith.constant 0 : index
    %c0_3 = arith.constant 0 : index
    %4 = vector.load %arg3[%c0_2, %c0_3] : memref<16x32xf32, #tpu.memory_space<vmem>>, vector<16x32xf32>
    %5 = arith.truncf %4 : vector<16x32xf32> to vector<16x32xbf16>
    %c0_4 = arith.constant 0 : index
    %c0_5 = arith.constant 0 : index
    %6 = vector.load %arg4[%c0_4, %c0_5] : memref<32x128xbf16, #tpu.memory_space<vmem>>, vector<32x128xbf16>
    %cst = arith.constant dense<0.000000e+00> : vector<16x128xf32>
    %7 = tpu.matmul %5, %6, %cst {dimension_numbers = #tpu.dot_dimension_numbers<[1], [0], [0], [1], [0, 0, 1, 1], [], []>} : vector<16x32xbf16>, vector<32x128xbf16>, vector<16x128xf32> -> vector<16x128xf32>
    %8 = arith.addf %3, %7 : vector<16x128xf32>
    %c0_6 = arith.constant 0 : index
    %c0_7 = arith.constant 0 : index
    %9 = vector.load %arg6[%c0_6, %c0_7] : memref<16x128xf32, #tpu.memory_space<vmem>>, vector<16x128xf32>
    tpu.vector_store %arg6[%c0_6, %c0_7], %8 {strides = array<i32>} : memref<16x128xf32, #tpu.memory_space<vmem>>, vector<16x128xf32>,
    %c0_i32_8 = arith.constant 0 : i32
    %10 = arith.cmpi eq, %arg2, %c0_i32_8 : i32
    %11 = arith.extui %10 : i1 to i32
    %c0_i32_9 = arith.constant 0 : i32
    %12 = arith.cmpi ne, %11, %c0_i32_9 : i32
    scf.if %12 {
      %c0_10 = arith.constant 0 : index
      %c0_11 = arith.constant 0 : index
      %13 = vector.load %arg6[%c0_10, %c0_11] : memref<16x128xf32, #tpu.memory_space<vmem>>, vector<16x128xf32>
      %c0_12 = arith.constant 0 : index
      %c0_13 = arith.constant 0 : index
      %14 = vector.load %arg5[%c0_12, %c0_13] : memref<16x128xf32, #tpu.memory_space<vmem>>, vector<16x128xf32>
      tpu.vector_store %arg5[%c0_12, %c0_13], %13 {strides = array<i32>} : memref<16x128xf32, #tpu.memory_space<vmem>>, vector<16x128xf32>,
    } else {
    }
    return
  }
  func.func @transform_0(%arg0: i32, %arg1: i32, %arg2: i32) -> (i32, i32) {
    %c0_i32 = arith.constant 0 : i32
    return %arg0, %arg2 : i32, i32
  }
  func.func @transform_1(%arg0: i32, %arg1: i32, %arg2: i32) -> (i32, i32) {
    %c0_i32 = arith.constant 0 : i32
    return %arg2, %arg1 : i32, i32
  }
  func.func @transform_2(%arg0: i32, %arg1: i32, %arg2: i32) -> (i32, i32) {
    %c0_i32 = arith.constant 0 : i32
    return %arg0, %arg1 : i32, i32
  }
}

module attributes {stable_mosaic.version = 11 : i64} {
  func.func @_linear_kernel(%arg0: i32, %arg1: i32, %arg2: i32, %arg3: memref<16x64xf32, #tpu.memory_space<vmem>>, %arg4: memref<64x32xbf16, #tpu.memory_space<vmem>>, %arg5: memref<16x32xf32, #tpu.memory_space<vmem>>, %arg6: memref<16x32xf32, #tpu.memory_space<vmem>>) attributes {dimension_semantics = [#tpu.dimension_semantics<parallel>, #tpu.dimension_semantics<parallel>, #tpu.dimension_semantics<arbitrary>], iteration_bounds = array<i64: 1, 1, 1>, scalar_prefetch = 0 : i64, scratch_operands = 1 : i64, tpu.core_type = #tpu.core_type<tc>, window_params = [{transform_indices = @transform_0, window_bounds = array<i64: 16, 64>}, {transform_indices = @transform_1, window_bounds = array<i64: 64, 32>}, {transform_indices = @transform_2, window_bounds = array<i64: 16, 32>}]} {
    %c0_i32 = arith.constant 0 : i32
    %0 = arith.cmpi eq, %arg2, %c0_i32 : i32
    %1 = arith.extui %0 : i1 to i32
    %c0_i32_0 = arith.constant 0 : i32
    %2 = arith.cmpi ne, %1, %c0_i32_0 : i32
    scf.if %2 {
      %cst_10 = arith.constant 0.000000e+00 : f32
      %13 = vector.broadcast %cst_10 : f32 to vector<16x32xf32>
      %c0_11 = arith.constant 0 : index
      %c0_12 = arith.constant 0 : index
      %14 = vector.load %arg6[%c0_11, %c0_12] : memref<16x32xf32, #tpu.memory_space<vmem>>, vector<16x32xf32>
      tpu.vector_store %arg6[%c0_11, %c0_12], %13 {strides = array<i32>} : memref<16x32xf32, #tpu.memory_space<vmem>>, vector<16x32xf32>,
    } else {
    }
    %c0 = arith.constant 0 : index
    %c0_1 = arith.constant 0 : index
    %3 = vector.load %arg6[%c0, %c0_1] : memref<16x32xf32, #tpu.memory_space<vmem>>, vector<16x32xf32>
    %c0_2 = arith.constant 0 : index
    %c0_3 = arith.constant 0 : index
    %4 = vector.load %arg3[%c0_2, %c0_3] : memref<16x64xf32, #tpu.memory_space<vmem>>, vector<16x64xf32>
    %5 = arith.truncf %4 : vector<16x64xf32> to vector<16x64xbf16>
    %c0_4 = arith.constant 0 : index
    %c0_5 = arith.constant 0 : index
    %6 = vector.load %arg4[%c0_4, %c0_5] : memref<64x32xbf16, #tpu.memory_space<vmem>>, vector<64x32xbf16>
    %cst = arith.constant dense<0.000000e+00> : vector<16x32xf32>
    %7 = tpu.matmul %5, %6, %cst {dimension_numbers = #tpu.dot_dimension_numbers<[1], [0], [0], [1], [0, 0, 1, 1], [], []>} : vector<16x64xbf16>, vector<64x32xbf16>, vector<16x32xf32> -> vector<16x32xf32>
    %8 = arith.addf %3, %7 : vector<16x32xf32>
    %c0_6 = arith.constant 0 : index
    %c0_7 = arith.constant 0 : index
    %9 = vector.load %arg6[%c0_6, %c0_7] : memref<16x32xf32, #tpu.memory_space<vmem>>, vector<16x32xf32>
    tpu.vector_store %arg6[%c0_6, %c0_7], %8 {strides = array<i32>} : memref<16x32xf32, #tpu.memory_space<vmem>>, vector<16x32xf32>,
    %c0_i32_8 = arith.constant 0 : i32
    %10 = arith.cmpi eq, %arg2, %c0_i32_8 : i32
    %11 = arith.extui %10 : i1 to i32
    %c0_i32_9 = arith.constant 0 : i32
    %12 = arith.cmpi ne, %11, %c0_i32_9 : i32
    scf.if %12 {
      %c0_10 = arith.constant 0 : index
      %c0_11 = arith.constant 0 : index
      %13 = vector.load %arg6[%c0_10, %c0_11] : memref<16x32xf32, #tpu.memory_space<vmem>>, vector<16x32xf32>
      %c0_12 = arith.constant 0 : index
      %c0_13 = arith.constant 0 : index
      %14 = vector.load %arg5[%c0_12, %c0_13] : memref<16x32xf32, #tpu.memory_space<vmem>>, vector<16x32xf32>
      tpu.vector_store %arg5[%c0_12, %c0_13], %13 {strides = array<i32>} : memref<16x32xf32, #tpu.memory_space<vmem>>, vector<16x32xf32>,
    } else {
    }
    return
  }
  func.func @transform_0(%arg0: i32, %arg1: i32, %arg2: i32) -> (i32, i32) {
    %c0_i32 = arith.constant 0 : i32
    return %arg0, %arg2 : i32, i32
  }
  func.func @transform_1(%arg0: i32, %arg1: i32, %arg2: i32) -> (i32, i32) {
    %c0_i32 = arith.constant 0 : i32
    return %arg2, %arg1 : i32, i32
  }
  func.func @transform_2(%arg0: i32, %arg1: i32, %arg2: i32) -> (i32, i32) {
    %c0_i32 = arith.constant 0 : i32
    return %arg0, %arg1 : i32, i32
  }
}

module attributes {stable_mosaic.version = 11 : i64} {
  func.func @_flash_attn_kernel(%arg0: i32, %arg1: i32, %arg2: i32, %arg3: i32, %arg4: memref<1xi32, #tpu.memory_space<smem>>, %arg5: memref<1x1x16x16xf32, #tpu.memory_space<vmem>>, %arg6: memref<1x1x16x16xf32, #tpu.memory_space<vmem>>, %arg7: memref<1x1x16x16xf32, #tpu.memory_space<vmem>>, %arg8: memref<16x1xi32, #tpu.memory_space<vmem>>, %arg9: memref<1x1x16x16xf32, #tpu.memory_space<vmem>>, %arg10: memref<16x1xf32, #tpu.memory_space<vmem>>, %arg11: memref<16x1xf32, #tpu.memory_space<vmem>>, %arg12: memref<16x16xf32, #tpu.memory_space<vmem>>) attributes {dimension_semantics = [#tpu.dimension_semantics<parallel>, #tpu.dimension_semantics<parallel>, #tpu.dimension_semantics<parallel>, #tpu.dimension_semantics<arbitrary>], iteration_bounds = array<i64: 2, 2, 1, 1>, scalar_prefetch = 1 : i64, scratch_operands = 3 : i64, tpu.core_type = #tpu.core_type<tc>, window_params = [{transform_indices = @transform_0, window_bounds = array<i64: 1, 1, 16, 16>}, {transform_indices = @transform_1, window_bounds = array<i64: 1, 1, 16, 16>}, {transform_indices = @transform_2, window_bounds = array<i64: 1, 1, 16, 16>}, {transform_indices = @transform_3, window_bounds = array<i64: 16, 1>}, {transform_indices = @transform_4, window_bounds = array<i64: 1, 1, 16, 16>}]} {
    %c0_i32 = arith.constant 0 : i32
    %0 = arith.cmpi eq, %arg3, %c0_i32 : i32
    %1 = arith.extui %0 : i1 to i32
    %c0_i32_0 = arith.constant 0 : i32
    %2 = arith.cmpi ne, %1, %c0_i32_0 : i32
    scf.if %2 {
      %cst = arith.constant 0xFF800000 : f32
      %12 = vector.broadcast %cst : f32 to vector<16x1xf32>
      %c0 = arith.constant 0 : index
      %c0_4 = arith.constant 0 : index
      %13 = vector.load %arg10[%c0, %c0_4] : memref<16x1xf32, #tpu.memory_space<vmem>>, vector<16x1xf32>
      tpu.vector_store %arg10[%c0, %c0_4], %12 {strides = array<i32>} : memref<16x1xf32, #tpu.memory_space<vmem>>, vector<16x1xf32>,
      %cst_5 = arith.constant 0.000000e+00 : f32
      %14 = vector.broadcast %cst_5 : f32 to vector<16x1xf32>
      %c0_6 = arith.constant 0 : index
      %c0_7 = arith.constant 0 : index
      %15 = vector.load %arg11[%c0_6, %c0_7] : memref<16x1xf32, #tpu.memory_space<vmem>>, vector<16x1xf32>
      tpu.vector_store %arg11[%c0_6, %c0_7], %14 {strides = array<i32>} : memref<16x1xf32, #tpu.memory_space<vmem>>, vector<16x1xf32>,
      %cst_8 = arith.constant 0.000000e+00 : f32
      %16 = vector.broadcast %cst_8 : f32 to vector<16x16xf32>
      %c0_9 = arith.constant 0 : index
      %c0_10 = arith.constant 0 : index
      %17 = vector.load %arg12[%c0_9, %c0_10] : memref<16x16xf32, #tpu.memory_space<vmem>>, vector<16x16xf32>
      tpu.vector_store %arg12[%c0_9, %c0_10], %16 {strides = array<i32>} : memref<16x16xf32, #tpu.memory_space<vmem>>, vector<16x16xf32>,
    } else {
    }
    %c16_i32 = arith.constant 16 : i32
    %3 = arith.muli %arg3, %c16_i32 : i32
    %4 = arith.index_cast %arg2 : i32 to index
    %5 = memref.load %arg4[%4] : memref<1xi32, #tpu.memory_space<smem>>
    %6 = arith.cmpi sle, %3, %5 : i32
    %7 = arith.extui %6 : i1 to i32
    %c0_i32_1 = arith.constant 0 : i32
    %8 = arith.cmpi ne, %7, %c0_i32_1 : i32
    scf.if %8 {
      %c0 = arith.constant 0 : index
      %c0_4 = arith.constant 0 : index
      %c0_5 = arith.constant 0 : index
      %c0_6 = arith.constant 0 : index
      %12 = vector.load %arg5[%c0, %c0_4, %c0_5, %c0_6] : memref<1x1x16x16xf32, #tpu.memory_space<vmem>>, vector<1x1x16x16xf32>
      %13 = vector.shape_cast %12 : vector<1x1x16x16xf32> to vector<16x16xf32>
      %14 = arith.truncf %13 : vector<16x16xf32> to vector<16x16xbf16>
      %c0_7 = arith.constant 0 : index
      %c0_8 = arith.constant 0 : index
      %c0_9 = arith.constant 0 : index
      %c0_10 = arith.constant 0 : index
      %15 = vector.load %arg6[%c0_7, %c0_8, %c0_9, %c0_10] : memref<1x1x16x16xf32, #tpu.memory_space<vmem>>, vector<1x1x16x16xf32>
      %16 = vector.shape_cast %15 : vector<1x1x16x16xf32> to vector<16x16xf32>
      %17 = arith.truncf %16 : vector<16x16xf32> to vector<16x16xbf16>
      %cst = arith.constant dense<0.000000e+00> : vector<16x16xf32>
      %18 = tpu.matmul %14, %17, %cst {dimension_numbers = #tpu.dot_dimension_numbers<[1], [1], [0], [0], [0, 0, 1, 0], [], []>} : vector<16x16xbf16>, vector<16x16xbf16>, vector<16x16xf32> -> vector<16x16xf32>
      %c16_i32_11 = arith.constant 16 : i32
      %19 = arith.muli %arg3, %c16_i32_11 : i32
      %20 = tpu.iota {dimensions = array<i32: 1>} : vector<16x16xi32>
      %21 = vector.broadcast %19 : i32 to vector<16x16xi32>
      %22 = arith.addi %21, %20 : vector<16x16xi32>
      %c0_12 = arith.constant 0 : index
      %c0_13 = arith.constant 0 : index
      %23 = vector.load %arg8[%c0_12, %c0_13] : memref<16x1xi32, #tpu.memory_space<vmem>>, vector<16x1xi32>
      %24 = vector.broadcast %23 : vector<16x1xi32> to vector<16x16xi32>
      %25 = arith.cmpi sle, %22, %24 : vector<16x16xi32>
      %cst_14 = arith.constant -1.000000e+30 : f32
      %26 = vector.broadcast %cst_14 : f32 to vector<16x16xf32>
      %27 = arith.select %25, %18, %26 : vector<16x16xi1>, vector<16x16xf32>
      %c0_15 = arith.constant 0 : index
      %c0_16 = arith.constant 0 : index
      %28 = vector.load %arg10[%c0_15, %c0_16] : memref<16x1xf32, #tpu.memory_space<vmem>>, vector<16x1xf32>
      %cst_17 = arith.constant dense<0xFF800000> : vector<16xf32>
      %29 = vector.multi_reduction <maximumf>, %27, %cst_17 [1] : vector<16x16xf32> to vector<16xf32>
      %30 = vector.shape_cast %29 : vector<16xf32> to vector<16x1xf32>
      %31 = arith.maximumf %28, %30 : vector<16x1xf32>
      %32 = arith.subf %28, %31 : vector<16x1xf32>
      %33 = math.exp %32 : vector<16x1xf32>
      %34 = vector.broadcast %31 : vector<16x1xf32> to vector<16x16xf32>
      %35 = arith.subf %27, %34 : vector<16x16xf32>
      %36 = math.exp %35 : vector<16x16xf32>
      %c0_18 = arith.constant 0 : index
      %c0_19 = arith.constant 0 : index
      %37 = vector.load %arg11[%c0_18, %c0_19] : memref<16x1xf32, #tpu.memory_space<vmem>>, vector<16x1xf32>
      %38 = arith.mulf %33, %37 : vector<16x1xf32>
      %cst_20 = arith.constant dense<0.000000e+00> : vector<16xf32>
      %39 = vector.multi_reduction <add>, %36, %cst_20 [1] : vector<16x16xf32> to vector<16xf32>
      %40 = vector.shape_cast %39 : vector<16xf32> to vector<16x1xf32>
      %41 = arith.addf %38, %40 : vector<16x1xf32>
      %c0_21 = arith.constant 0 : index
      %c0_22 = arith.constant 0 : index
      %42 = vector.load %arg11[%c0_21, %c0_22] : memref<16x1xf32, #tpu.memory_space<vmem>>, vector<16x1xf32>
      tpu.vector_store %arg11[%c0_21, %c0_22], %41 {strides = array<i32>} : memref<16x1xf32, #tpu.memory_space<vmem>>, vector<16x1xf32>,
      %c0_23 = arith.constant 0 : index
      %c0_24 = arith.constant 0 : index
      %43 = vector.load %arg12[%c0_23, %c0_24] : memref<16x16xf32, #tpu.memory_space<vmem>>, vector<16x16xf32>
      %44 = vector.broadcast %33 : vector<16x1xf32> to vector<16x16xf32>
      %45 = arith.mulf %44, %43 : vector<16x16xf32>
      %46 = arith.truncf %36 : vector<16x16xf32> to vector<16x16xbf16>
      %c0_25 = arith.constant 0 : index
      %c0_26 = arith.constant 0 : index
      %c0_27 = arith.constant 0 : index
      %c0_28 = arith.constant 0 : index
      %47 = vector.load %arg7[%c0_25, %c0_26, %c0_27, %c0_28] : memref<1x1x16x16xf32, #tpu.memory_space<vmem>>, vector<1x1x16x16xf32>
      %48 = vector.shape_cast %47 : vector<1x1x16x16xf32> to vector<16x16xf32>
      %49 = arith.truncf %48 : vector<16x16xf32> to vector<16x16xbf16>
      %cst_29 = arith.constant dense<0.000000e+00> : vector<16x16xf32>
      %50 = tpu.matmul %46, %49, %cst_29 {dimension_numbers = #tpu.dot_dimension_numbers<[1], [0], [0], [1], [0, 0, 1, 1], [], []>} : vector<16x16xbf16>, vector<16x16xbf16>, vector<16x16xf32> -> vector<16x16xf32>
      %51 = arith.addf %45, %50 : vector<16x16xf32>
      %c0_30 = arith.constant 0 : index
      %c0_31 = arith.constant 0 : index
      %52 = vector.load %arg12[%c0_30, %c0_31] : memref<16x16xf32, #tpu.memory_space<vmem>>, vector<16x16xf32>
      tpu.vector_store %arg12[%c0_30, %c0_31], %51 {strides = array<i32>} : memref<16x16xf32, #tpu.memory_space<vmem>>, vector<16x16xf32>,
      %c0_32 = arith.constant 0 : index
      %c0_33 = arith.constant 0 : index
      %53 = vector.load %arg10[%c0_32, %c0_33] : memref<16x1xf32, #tpu.memory_space<vmem>>, vector<16x1xf32>
      tpu.vector_store %arg10[%c0_32, %c0_33], %31 {strides = array<i32>} : memref<16x1xf32, #tpu.memory_space<vmem>>, vector<16x1xf32>,
    } else {
    }
    %c0_i32_2 = arith.constant 0 : i32
    %9 = arith.cmpi eq, %arg3, %c0_i32_2 : i32
    %10 = arith.extui %9 : i1 to i32
    %c0_i32_3 = arith.constant 0 : i32
    %11 = arith.cmpi ne, %10, %c0_i32_3 : i32
    scf.if %11 {
      %c0 = arith.constant 0 : index
      %c0_4 = arith.constant 0 : index
      %12 = vector.load %arg12[%c0, %c0_4] : memref<16x16xf32, #tpu.memory_space<vmem>>, vector<16x16xf32>
      %c0_5 = arith.constant 0 : index
      %c0_6 = arith.constant 0 : index
      %13 = vector.load %arg11[%c0_5, %c0_6] : memref<16x1xf32, #tpu.memory_space<vmem>>, vector<16x1xf32>
      %14 = tpu.reciprocal %13 {approx = true} : vector<16x1xf32> -> vector<16x1xf32>
      %15 = vector.broadcast %14 : vector<16x1xf32> to vector<16x16xf32>
      %16 = arith.mulf %12, %15 : vector<16x16xf32>
      %c0_7 = arith.constant 0 : index
      %c0_8 = arith.constant 0 : index
      %c0_9 = arith.constant 0 : index
      %c0_10 = arith.constant 0 : index
      %17 = vector.load %arg9[%c0_7, %c0_8, %c0_9, %c0_10] : memref<1x1x16x16xf32, #tpu.memory_space<vmem>>, vector<1x1x16x16xf32>
      %18 = vector.shape_cast %17 : vector<1x1x16x16xf32> to vector<16x16xf32>
      %19 = vector.shape_cast %16 : vector<16x16xf32> to vector<1x1x16x16xf32>
      tpu.vector_store %arg9[%c0_7, %c0_8, %c0_9, %c0_10], %19 {strides = array<i32>} : memref<1x1x16x16xf32, #tpu.memory_space<vmem>>, vector<1x1x16x16xf32>,
    } else {
    }
    return
  }
  func.func @transform_0(%arg0: i32, %arg1: i32, %arg2: i32, %arg3: i32, %arg4: memref<1xi32, #tpu.memory_space<smem>>) -> (i32, i32, i32, i32) {
    %c0_i32 = arith.constant 0 : i32
    %c0_i32_0 = arith.constant 0 : i32
    return %arg0, %arg1, %arg2, %c0_i32 : i32, i32, i32, i32
  }
  func.func @transform_1(%arg0: i32, %arg1: i32, %arg2: i32, %arg3: i32, %arg4: memref<1xi32, #tpu.memory_space<smem>>) -> (i32, i32, i32, i32) {
    %c0_i32 = arith.constant 0 : i32
    %c0_i32_0 = arith.constant 0 : i32
    return %arg0, %arg1, %arg3, %c0_i32 : i32, i32, i32, i32
  }
  func.func @transform_2(%arg0: i32, %arg1: i32, %arg2: i32, %arg3: i32, %arg4: memref<1xi32, #tpu.memory_space<smem>>) -> (i32, i32, i32, i32) {
    %c0_i32 = arith.constant 0 : i32
    %c0_i32_0 = arith.constant 0 : i32
    return %arg0, %arg1, %arg3, %c0_i32 : i32, i32, i32, i32
  }
  func.func @transform_3(%arg0: i32, %arg1: i32, %arg2: i32, %arg3: i32, %arg4: memref<1xi32, #tpu.memory_space<smem>>) -> (i32, i32) {
    %c0_i32 = arith.constant 0 : i32
    %c0_i32_0 = arith.constant 0 : i32
    return %arg2, %c0_i32 : i32, i32
  }
  func.func @transform_4(%arg0: i32, %arg1: i32, %arg2: i32, %arg3: i32, %arg4: memref<1xi32, #tpu.memory_space<smem>>) -> (i32, i32, i32, i32) {
    %c0_i32 = arith.constant 0 : i32
    %c0_i32_0 = arith.constant 0 : i32
    return %arg0, %arg1, %arg2, %c0_i32 : i32, i32, i32, i32
  }
}

module attributes {stable_mosaic.version = 11 : i64} {
  func.func @_add_rmsnorm_kernel(%arg0: i32, %arg1: memref<16x32xf32, #tpu.memory_space<vmem>>, %arg2: memref<16x32xf32, #tpu.memory_space<vmem>>, %arg3: memref<1x32xf32, #tpu.memory_space<vmem>>, %arg4: memref<16x32xf32, #tpu.memory_space<vmem>>, %arg5: memref<16x32xf32, #tpu.memory_space<vmem>>) attributes {dimension_semantics = [#tpu.dimension_semantics<parallel>], iteration_bounds = array<i64: 1>, scalar_prefetch = 0 : i64, scratch_operands = 0 : i64, tpu.core_type = #tpu.core_type<tc>, window_params = [{transform_indices = @transform_0, window_bounds = array<i64: 16, 32>}, {transform_indices = @transform_1, window_bounds = array<i64: 16, 32>}, {pipeline_mode = #tpu.pipeline_mode<synchronous>, transform_indices = @transform_2, window_bounds = array<i64: 1, 32>}, {transform_indices = @transform_3, window_bounds = array<i64: 16, 32>}, {transform_indices = @transform_4, window_bounds = array<i64: 16, 32>}]} {
    %c0 = arith.constant 0 : index
    %c0_0 = arith.constant 0 : index
    %0 = vector.load %arg1[%c0, %c0_0] : memref<16x32xf32, #tpu.memory_space<vmem>>, vector<16x32xf32>
    %c0_1 = arith.constant 0 : index
    %c0_2 = arith.constant 0 : index
    %1 = vector.load %arg2[%c0_1, %c0_2] : memref<16x32xf32, #tpu.memory_space<vmem>>, vector<16x32xf32>
    %2 = arith.addf %0, %1 : vector<16x32xf32>
    %c0_3 = arith.constant 0 : index
    %c0_4 = arith.constant 0 : index
    %3 = vector.load %arg4[%c0_3, %c0_4] : memref<16x32xf32, #tpu.memory_space<vmem>>, vector<16x32xf32>
    tpu.vector_store %arg4[%c0_3, %c0_4], %2 {strides = array<i32>} : memref<16x32xf32, #tpu.memory_space<vmem>>, vector<16x32xf32>,
    %4 = arith.mulf %2, %2 : vector<16x32xf32>
    %cst = arith.constant dense<0.000000e+00> : vector<16xf32>
    %5 = vector.multi_reduction <add>, %4, %cst [1] : vector<16x32xf32> to vector<16xf32>
    %6 = vector.shape_cast %5 : vector<16xf32> to vector<16x1xf32>
    %cst_5 = arith.constant 3.200000e+01 : f32
    %7 = vector.broadcast %cst_5 : f32 to vector<16x1xf32>
    %8 = arith.divf %6, %7 : vector<16x1xf32>
    %cst_6 = arith.constant 9.99999997E-7 : f32
    %9 = vector.broadcast %cst_6 : f32 to vector<16x1xf32>
    %10 = arith.addf %8, %9 : vector<16x1xf32>
    %11 = math.rsqrt %10 : vector<16x1xf32>
    %12 = vector.broadcast %11 : vector<16x1xf32> to vector<16x32xf32>
    %13 = arith.mulf %2, %12 : vector<16x32xf32>
    %c0_7 = arith.constant 0 : index
    %c0_8 = arith.constant 0 : index
    %14 = vector.load %arg3[%c0_7, %c0_8] : memref<1x32xf32, #tpu.memory_space<vmem>>, vector<1x32xf32>
    %cst_9 = arith.constant 1.000000e+00 : f32
    %15 = vector.broadcast %cst_9 : f32 to vector<1x32xf32>
    %16 = arith.addf %15, %14 : vector<1x32xf32>
    %17 = vector.broadcast %16 : vector<1x32xf32> to vector<16x32xf32>
    %18 = arith.mulf %13, %17 : vector<16x32xf32>
    %c0_10 = arith.constant 0 : index
    %c0_11 = arith.constant 0 : index
    %19 = vector.load %arg5[%c0_10, %c0_11] : memref<16x32xf32, #tpu.memory_space<vmem>>, vector<16x32xf32>
    tpu.vector_store %arg5[%c0_10, %c0_11], %18 {strides = array<i32>} : memref<16x32xf32, #tpu.memory_space<vmem>>, vector<16x32xf32>,
    return
  }
  func.func @transform_0(%arg0: i32) -> (i32, i32) {
    %c0_i32 = arith.constant 0 : i32
    %c0_i32_0 = arith.constant 0 : i32
    return %arg0, %c0_i32 : i32, i32
  }
  func.func @transform_1(%arg0: i32) -> (i32, i32) {
    %c0_i32 = arith.constant 0 : i32
    %c0_i32_0 = arith.constant 0 : i32
    return %arg0, %c0_i32 : i32, i32
  }
  func.func @transform_2(%arg0: i32) -> (i32, i32) {
    %c0_i32 = arith.constant 0 : i32
    %c0_i32_0 = arith.constant 0 : i32
    %c0_i32_1 = arith.constant 0 : i32
    return %c0_i32, %c0_i32_0 : i32, i32
  }
  func.func @transform_3(%arg0: i32) -> (i32, i32) {
    %c0_i32 = arith.constant 0 : i32
    %c0_i32_0 = arith.constant 0 : i32
    return %arg0, %c0_i32 : i32, i32
  }
  func.func @transform_4(%arg0: i32) -> (i32, i32) {
    %c0_i32 = arith.constant 0 : i32
    %c0_i32_0 = arith.constant 0 : i32
    return %arg0, %c0_i32 : i32, i32
  }
}

module attributes {stable_mosaic.version = 11 : i64} {
  func.func @_mlp_kernel(%arg0: i32, %arg1: i32, %arg2: memref<16x32xf32, #tpu.memory_space<vmem>>, %arg3: memref<32x64xbf16, #tpu.memory_space<vmem>>, %arg4: memref<32x64xbf16, #tpu.memory_space<vmem>>, %arg5: memref<64x32xbf16, #tpu.memory_space<vmem>>, %arg6: memref<16x32xf32, #tpu.memory_space<vmem>>, %arg7: memref<16x32xf32, #tpu.memory_space<vmem>>) attributes {dimension_semantics = [#tpu.dimension_semantics<parallel>, #tpu.dimension_semantics<arbitrary>], iteration_bounds = array<i64: 1, 1>, scalar_prefetch = 0 : i64, scratch_operands = 1 : i64, tpu.core_type = #tpu.core_type<tc>, window_params = [{transform_indices = @transform_0, window_bounds = array<i64: 16, 32>}, {transform_indices = @transform_1, window_bounds = array<i64: 32, 64>}, {transform_indices = @transform_2, window_bounds = array<i64: 32, 64>}, {transform_indices = @transform_3, window_bounds = array<i64: 64, 32>}, {transform_indices = @transform_4, window_bounds = array<i64: 16, 32>}]} {
    %c0_i32 = arith.constant 0 : i32
    %0 = arith.cmpi eq, %arg1, %c0_i32 : i32
    %1 = arith.extui %0 : i1 to i32
    %c0_i32_0 = arith.constant 0 : i32
    %2 = arith.cmpi ne, %1, %c0_i32_0 : i32
    scf.if %2 {
      %cst_30 = arith.constant 0.000000e+00 : f32
      %58 = vector.broadcast %cst_30 : f32 to vector<16x32xf32>
      %c0_31 = arith.constant 0 : index
      %c0_32 = arith.constant 0 : index
      %59 = vector.load %arg7[%c0_31, %c0_32] : memref<16x32xf32, #tpu.memory_space<vmem>>, vector<16x32xf32>
      tpu.vector_store %arg7[%c0_31, %c0_32], %58 {strides = array<i32>} : memref<16x32xf32, #tpu.memory_space<vmem>>, vector<16x32xf32>,
    } else {
    }
    %c0 = arith.constant 0 : index
    %c0_1 = arith.constant 0 : index
    %3 = vector.load %arg2[%c0, %c0_1] : memref<16x32xf32, #tpu.memory_space<vmem>>, vector<16x32xf32>
    %4 = arith.truncf %3 : vector<16x32xf32> to vector<16x32xbf16>
    %c0_2 = arith.constant 0 : index
    %c0_3 = arith.constant 0 : index
    %5 = vector.load %arg3[%c0_2, %c0_3] : memref<32x64xbf16, #tpu.memory_space<vmem>>, vector<32x64xbf16>
    %cst = arith.constant dense<0.000000e+00> : vector<16x64xf32>
    %6 = tpu.matmul %4, %5, %cst {dimension_numbers = #tpu.dot_dimension_numbers<[1], [0], [0], [1], [0, 0, 1, 1], [], []>} : vector<16x32xbf16>, vector<32x64xbf16>, vector<16x64xf32> -> vector<16x64xf32>
    %c0_4 = arith.constant 0 : index
    %c0_5 = arith.constant 0 : index
    %7 = vector.load %arg4[%c0_4, %c0_5] : memref<32x64xbf16, #tpu.memory_space<vmem>>, vector<32x64xbf16>
    %cst_6 = arith.constant dense<0.000000e+00> : vector<16x64xf32>
    %8 = tpu.matmul %4, %7, %cst_6 {dimension_numbers = #tpu.dot_dimension_numbers<[1], [0], [0], [1], [0, 0, 1, 1], [], []>} : vector<16x32xbf16>, vector<32x64xbf16>, vector<16x64xf32> -> vector<16x64xf32>
    %cst_7 = arith.constant 5.000000e-01 : f32
    %9 = vector.broadcast %cst_7 : f32 to vector<16x64xf32>
    %10 = arith.mulf %9, %6 : vector<16x64xf32>
    %cst_8 = arith.constant 0.707106769 : f32
    %11 = vector.broadcast %cst_8 : f32 to vector<16x64xf32>
    %12 = arith.mulf %6, %11 : vector<16x64xf32>
    %13 = math.absf %12 : vector<16x64xf32>
    %cst_9 = arith.constant 0.327591091 : f32
    %14 = vector.broadcast %cst_9 : f32 to vector<16x64xf32>
    %15 = arith.mulf %14, %13 : vector<16x64xf32>
    %cst_10 = arith.constant 1.000000e+00 : f32
    %16 = vector.broadcast %cst_10 : f32 to vector<16x64xf32>
    %17 = arith.addf %16, %15 : vector<16x64xf32>
    %18 = tpu.reciprocal %17 {approx = true} : vector<16x64xf32> -> vector<16x64xf32>
    %cst_11 = arith.constant 1.06140542 : f32
    %19 = vector.broadcast %cst_11 : f32 to vector<16x64xf32>
    %20 = arith.mulf %19, %18 : vector<16x64xf32>
    %cst_12 = arith.constant -1.45315206 : f32
    %21 = vector.broadcast %cst_12 : f32 to vector<16x64xf32>
    %22 = arith.addf %20, %21 : vector<16x64xf32>
    %23 = arith.mulf %22, %18 : vector<16x64xf32>
    %cst_13 = arith.constant 1.42141378 : f32
    %24 = vector.broadcast %cst_13 : f32 to vector<16x64xf32>
    %25 = arith.addf %23, %24 : vector<16x64xf32>
    %26 = arith.mulf %25, %18 : vector<16x64xf32>
    %cst_14 = arith.constant -0.284496725 : f32
    %27 = vector.broadcast %cst_14 : f32 to vector<16x64xf32>
    %28 = arith.addf %26, %27 : vector<16x64xf32>
    %29 = arith.mulf %28, %18 : vector<16x64xf32>
    %cst_15 = arith.constant 0.254829586 : f32
    %30 = vector.broadcast %cst_15 : f32 to vector<16x64xf32>
    %31 = arith.addf %29, %30 : vector<16x64xf32>
    %32 = arith.mulf %31, %18 : vector<16x64xf32>
    %cst_16 = arith.constant 0.000000e+00 : f32
    %33 = vector.broadcast %cst_16 : f32 to vector<16x64xf32>
    %34 = arith.subf %33, %13 : vector<16x64xf32>
    %35 = arith.mulf %34, %13 : vector<16x64xf32>
    %36 = math.exp %35 : vector<16x64xf32>
    %37 = arith.mulf %32, %36 : vector<16x64xf32>
    %cst_17 = arith.constant 1.000000e+00 : f32
    %38 = vector.broadcast %cst_17 : f32 to vector<16x64xf32>
    %39 = arith.subf %38, %37 : vector<16x64xf32>
    %cst_18 = arith.constant 0.000000e+00 : f32
    %40 = vector.broadcast %cst_18 : f32 to vector<16x64xf32>
    %41 = arith.cmpf oge, %12, %40 : vector<16x64xf32>
    %cst_19 = arith.constant 0.000000e+00 : f32
    %42 = vector.broadcast %cst_19 : f32 to vector<16x64xf32>
    %43 = arith.subf %42, %39 : vector<16x64xf32>
    %44 = arith.select %41, %39, %43 : vector<16x64xi1>, vector<16x64xf32>
    %cst_20 = arith.constant 1.000000e+00 : f32
    %45 = vector.broadcast %cst_20 : f32 to vector<16x64xf32>
    %46 = arith.addf %45, %44 : vector<16x64xf32>
    %47 = arith.mulf %10, %46 : vector<16x64xf32>
    %48 = arith.mulf %47, %8 : vector<16x64xf32>
    %c0_21 = arith.constant 0 : index
    %c0_22 = arith.constant 0 : index
    %49 = vector.load %arg7[%c0_21, %c0_22] : memref<16x32xf32, #tpu.memory_space<vmem>>, vector<16x32xf32>
    %50 = arith.truncf %48 : vector<16x64xf32> to vector<16x64xbf16>
    %c0_23 = arith.constant 0 : index
    %c0_24 = arith.constant 0 : index
    %51 = vector.load %arg5[%c0_23, %c0_24] : memref<64x32xbf16, #tpu.memory_space<vmem>>, vector<64x32xbf16>
    %cst_25 = arith.constant dense<0.000000e+00> : vector<16x32xf32>
    %52 = tpu.matmul %50, %51, %cst_25 {dimension_numbers = #tpu.dot_dimension_numbers<[1], [0], [0], [1], [0, 0, 1, 1], [], []>} : vector<16x64xbf16>, vector<64x32xbf16>, vector<16x32xf32> -> vector<16x32xf32>
    %53 = arith.addf %49, %52 : vector<16x32xf32>
    %c0_26 = arith.constant 0 : index
    %c0_27 = arith.constant 0 : index
    %54 = vector.load %arg7[%c0_26, %c0_27] : memref<16x32xf32, #tpu.memory_space<vmem>>, vector<16x32xf32>
    tpu.vector_store %arg7[%c0_26, %c0_27], %53 {strides = array<i32>} : memref<16x32xf32, #tpu.memory_space<vmem>>, vector<16x32xf32>,
    %c0_i32_28 = arith.constant 0 : i32
    %55 = arith.cmpi eq, %arg1, %c0_i32_28 : i32
    %56 = arith.extui %55 : i1 to i32
    %c0_i32_29 = arith.constant 0 : i32
    %57 = arith.cmpi ne, %56, %c0_i32_29 : i32
    scf.if %57 {
      %c0_30 = arith.constant 0 : index
      %c0_31 = arith.constant 0 : index
      %58 = vector.load %arg7[%c0_30, %c0_31] : memref<16x32xf32, #tpu.memory_space<vmem>>, vector<16x32xf32>
      %c0_32 = arith.constant 0 : index
      %c0_33 = arith.constant 0 : index
      %59 = vector.load %arg6[%c0_32, %c0_33] : memref<16x32xf32, #tpu.memory_space<vmem>>, vector<16x32xf32>
      tpu.vector_store %arg6[%c0_32, %c0_33], %58 {strides = array<i32>} : memref<16x32xf32, #tpu.memory_space<vmem>>, vector<16x32xf32>,
    } else {
    }
    return
  }
  func.func @transform_0(%arg0: i32, %arg1: i32) -> (i32, i32) {
    %c0_i32 = arith.constant 0 : i32
    %c0_i32_0 = arith.constant 0 : i32
    return %arg0, %c0_i32 : i32, i32
  }
  func.func @transform_1(%arg0: i32, %arg1: i32) -> (i32, i32) {
    %c0_i32 = arith.constant 0 : i32
    %c0_i32_0 = arith.constant 0 : i32
    return %c0_i32, %arg1 : i32, i32
  }
  func.func @transform_2(%arg0: i32, %arg1: i32) -> (i32, i32) {
    %c0_i32 = arith.constant 0 : i32
    %c0_i32_0 = arith.constant 0 : i32
    return %c0_i32, %arg1 : i32, i32
  }
  func.func @transform_3(%arg0: i32, %arg1: i32) -> (i32, i32) {
    %c0_i32 = arith.constant 0 : i32
    %c0_i32_0 = arith.constant 0 : i32
    return %arg1, %c0_i32 : i32, i32
  }
  func.func @transform_4(%arg0: i32, %arg1: i32) -> (i32, i32) {
    %c0_i32 = arith.constant 0 : i32
    %c0_i32_0 = arith.constant 0 : i32
    return %arg0, %c0_i32 : i32, i32
  }
}

module attributes {stable_mosaic.version = 11 : i64} {
  func.func @_add_rmsnorm_kernel(%arg0: i32, %arg1: memref<16x32xf32, #tpu.memory_space<vmem>>, %arg2: memref<16x32xf32, #tpu.memory_space<vmem>>, %arg3: memref<1x32xf32, #tpu.memory_space<vmem>>, %arg4: memref<16x32xf32, #tpu.memory_space<vmem>>, %arg5: memref<16x32xf32, #tpu.memory_space<vmem>>) attributes {dimension_semantics = [#tpu.dimension_semantics<parallel>], iteration_bounds = array<i64: 1>, scalar_prefetch = 0 : i64, scratch_operands = 0 : i64, tpu.core_type = #tpu.core_type<tc>, window_params = [{transform_indices = @transform_0, window_bounds = array<i64: 16, 32>}, {transform_indices = @transform_1, window_bounds = array<i64: 16, 32>}, {pipeline_mode = #tpu.pipeline_mode<synchronous>, transform_indices = @transform_2, window_bounds = array<i64: 1, 32>}, {transform_indices = @transform_3, window_bounds = array<i64: 16, 32>}, {transform_indices = @transform_4, window_bounds = array<i64: 16, 32>}]} {
    %c0 = arith.constant 0 : index
    %c0_0 = arith.constant 0 : index
    %0 = vector.load %arg1[%c0, %c0_0] : memref<16x32xf32, #tpu.memory_space<vmem>>, vector<16x32xf32>
    %c0_1 = arith.constant 0 : index
    %c0_2 = arith.constant 0 : index
    %1 = vector.load %arg2[%c0_1, %c0_2] : memref<16x32xf32, #tpu.memory_space<vmem>>, vector<16x32xf32>
    %2 = arith.addf %0, %1 : vector<16x32xf32>
    %c0_3 = arith.constant 0 : index
    %c0_4 = arith.constant 0 : index
    %3 = vector.load %arg4[%c0_3, %c0_4] : memref<16x32xf32, #tpu.memory_space<vmem>>, vector<16x32xf32>
    tpu.vector_store %arg4[%c0_3, %c0_4], %2 {strides = array<i32>} : memref<16x32xf32, #tpu.memory_space<vmem>>, vector<16x32xf32>,
    %4 = arith.mulf %2, %2 : vector<16x32xf32>
    %cst = arith.constant dense<0.000000e+00> : vector<16xf32>
    %5 = vector.multi_reduction <add>, %4, %cst [1] : vector<16x32xf32> to vector<16xf32>
    %6 = vector.shape_cast %5 : vector<16xf32> to vector<16x1xf32>
    %cst_5 = arith.constant 3.200000e+01 : f32
    %7 = vector.broadcast %cst_5 : f32 to vector<16x1xf32>
    %8 = arith.divf %6, %7 : vector<16x1xf32>
    %cst_6 = arith.constant 9.99999997E-7 : f32
    %9 = vector.broadcast %cst_6 : f32 to vector<16x1xf32>
    %10 = arith.addf %8, %9 : vector<16x1xf32>
    %11 = math.rsqrt %10 : vector<16x1xf32>
    %12 = vector.broadcast %11 : vector<16x1xf32> to vector<16x32xf32>
    %13 = arith.mulf %2, %12 : vector<16x32xf32>
    %c0_7 = arith.constant 0 : index
    %c0_8 = arith.constant 0 : index
    %14 = vector.load %arg3[%c0_7, %c0_8] : memref<1x32xf32, #tpu.memory_space<vmem>>, vector<1x32xf32>
    %cst_9 = arith.constant 1.000000e+00 : f32
    %15 = vector.broadcast %cst_9 : f32 to vector<1x32xf32>
    %16 = arith.addf %15, %14 : vector<1x32xf32>
    %17 = vector.broadcast %16 : vector<1x32xf32> to vector<16x32xf32>
    %18 = arith.mulf %13, %17 : vector<16x32xf32>
    %c0_10 = arith.constant 0 : index
    %c0_11 = arith.constant 0 : index
    %19 = vector.load %arg5[%c0_10, %c0_11] : memref<16x32xf32, #tpu.memory_space<vmem>>, vector<16x32xf32>
    tpu.vector_store %arg5[%c0_10, %c0_11], %18 {strides = array<i32>} : memref<16x32xf32, #tpu.memory_space<vmem>>, vector<16x32xf32>,
    return
  }
  func.func @transform_0(%arg0: i32) -> (i32, i32) {
    %c0_i32 = arith.constant 0 : i32
    %c0_i32_0 = arith.constant 0 : i32
    return %arg0, %c0_i32 : i32, i32
  }
  func.func @transform_1(%arg0: i32) -> (i32, i32) {
    %c0_i32 = arith.constant 0 : i32
    %c0_i32_0 = arith.constant 0 : i32
    return %arg0, %c0_i32 : i32, i32
  }
  func.func @transform_2(%arg0: i32) -> (i32, i32) {
    %c0_i32 = arith.constant 0 : i32
    %c0_i32_0 = arith.constant 0 : i32
    %c0_i32_1 = arith.constant 0 : i32
    return %c0_i32, %c0_i32_0 : i32, i32
  }
  func.func @transform_3(%arg0: i32) -> (i32, i32) {
    %c0_i32 = arith.constant 0 : i32
    %c0_i32_0 = arith.constant 0 : i32
    return %arg0, %c0_i32 : i32, i32
  }
  func.func @transform_4(%arg0: i32) -> (i32, i32) {
    %c0_i32 = arith.constant 0 : i32
    %c0_i32_0 = arith.constant 0 : i32
    return %arg0, %c0_i32 : i32, i32
  }
}

</mosaic_0001>

<bundles_post_ra>
// kernel: forward_fn.14
= control target key start
LH: loop header
LB: loop body
LE: loop exit
PB: predicated region body
PF: predicated region fallthrough
CT: control target
= control target key end

     0   :  { %v117_v0 = vmov 0.0   ;;  %vm118_vm0 = vmmov 0   ;;  %vm39_vm1 = vcmask 261120   ;;  %s152_s1 = inlined_call_operand.vmem [shape: bf16[32,128], index: 1, kind: input, shape index: {}]   ;;  %s153_s0 = inlined_call_operand.vmem [shape: f32[16,32], index: 0, kind: input, shape index: {}]   ;;  %s154_s2 = inlined_call_operand.vmem [shape: f32[16,128], index: 2, kind: output, shape index: {}]  }
   0x1   :  { %105 = vmatprep.subr.bf16.mxu0 %v117_v0  ;;  %v115_v1 = vld [vmem:[%s152_s1] sm:$0xff]   ;;  %109 = vmatprep.mubr.msk.bf16.mxu0 %vm118_vm0, %v117_v0  ;;  %v116_v2 = vld [vmem:[%s152_s1 + $0x8] sm:$0xff]  }
   0x2   :  { %106 = vmatpush3.bf16.msra.mxu0 %v115_v1  ;;  %v20_v3 = vld [vmem:[%s153_s0] sm:$0xff]  ;;  %v21_v4 = vld [vmem:[%s153_s0 + $0x8] sm:$0xff] }
   0x3   :  { %107 = vmatprep.subr.bf16.mxu0 %v117_v0  ;;  %v22_v5 = vpack.c.bf16 %v21_v4, %v20_v3 }
   0x6   :  { %108 = vmatpush3.bf16.msra.mxu0 %v116_v2 }
   0x9   :  { %110 = vmatmul.mubr.msk.bf16.vlgmr.msra.gmra.mrb[0].mxu0 %vm39_vm1, %v22_v5 }
  0xdc   :  { %v77_v6 = vpop.f32.mrb[0].mxu0 }
  0xdd   :  { %93 = vst [vmem:[%s154_s2] sm:$0xff] %v77_v6  ;;  %v111_v7 = vpop.f32.mrb[1].mxu0 }
  0xde   :  { %v80_v8 = vpop.f32.mrb[2].mxu0 }
  0xdf   :  { %94 = vst [vmem:[%s154_s2 + $0x8] sm:$0xff] %v80_v8  ;;  %v112_v9 = vpop.f32.mrb[3].mxu0 }

// kernel: forward_fn.13
= control target key start
LH: loop header
LB: loop body
LE: loop exit
PB: predicated region body
PF: predicated region fallthrough
CT: control target
= control target key end

     0   :  { %vm15_vm0 = vcmask 261120   ;;  %v34_v8 = vlaneseq  ;;  %s85_s0 = inlined_call_operand.vmem [shape: f32[16,32], index: 0, kind: input, shape index: {}]   ;;  %s86_s1 = inlined_call_operand.vmem [shape: f32[1,32], index: 1, kind: input, shape index: {}]   ;;  %s87_s2 = inlined_call_operand.vmem [shape: f32[16,32], index: 2, kind: output, shape index: {}]  }
   0x1   :  { %v11_v0 = vld [vmem:[%s85_s0] sm:$0xff]  ;;  %v12_v1 = vld [vmem:[%s85_s0 + $0x8] sm:$0xff] }
   0x2   :  { %v13_v2 = vmul.f32 %v11_v0, %v11_v0  ;;  %v14_v3 = vmul.f32 %v12_v1, %v12_v1  ;;  %v35_v12 = vshrl.u32 %v34_v8, 7  ;;  %v31_v13 = vld [vmem:[%s86_s1] sm:$0x1] }
   0x3   :  { %v32_v15 = vadd.f32 1.0, %v31_v13 }
   0x4   :  { %v16_v4 = vsel %vm15_vm0, %v13_v2, 0.0  ;;  %v19_v5 = vsel %vm15_vm0, %v14_v3, 0.0  ;;  %v36_v16 = vsub.s32 0, %v35_v12 }
   0x5   :  { %17 = vadd.xlane.f32.xlu0 %v16_v4 }
   0x6   :  { %v37_v17 = vrot.slane %v32_v15, %v36_v16 }
   0x9   :  { %20 = vadd.xlane.f32.xlu0 %v19_v5 }
  0x92   :  { %v18_v6 = vpop.xlane.xlu0 %17 }
  0x93   :  { %v23_v7 = vmul.f32 0.03125, %v18_v6 }
  0x95   :  { %v25_v9 = vadd.f32 1e-06, %v23_v7 }
  0x96   :  { %v21_v10 = vpop.xlane.xlu0 %20 }
  0x97   :  { %47 = vrsqrt.f32 %v25_v9  ;;  %v24_v11 = vmul.f32 0.03125, %v21_v10 }
  0x99   :  { %v26_v14 = vadd.f32 1e-06, %v24_v11 }
  0x9b   :  { %49 = vrsqrt.f32 %v26_v14 }
  0xa1   :  { %v48_v18 = vpop.eup %47 }
  0xa2   :  { %v29_v19 = vmul.f32 %v48_v18, %v11_v0 }
  0xa4   :  { %v39_v20 = vmul.f32 %v37_v17, %v29_v19 }
  0xa5   :  { %v50_v21 = vpop.eup %49 }
  0xa6   :  { %41 = vst.msk [vmem:[%s87_s2] sm:$0xff] %vm15_vm0, %v39_v20  ;;  %v30_v22 = vmul.f32 %v50_v21, %v12_v1 }
  0xa8   :  { %v40_v23 = vmul.f32 %v37_v17, %v30_v22 }
  0xaa   :  { %42 = vst.msk [vmem:[%s87_s2 + $0x8] sm:$0xff] %vm15_vm0, %v40_v23 }

// kernel: tile.15
= control target key start
LH: loop header
LB: loop body
LE: loop exit
PB: predicated region body
PF: predicated region fallthrough
CT: control target
= control target key end

     0   :  { %s22_s0 = inlined_call_operand.vmem [shape: s32[8], index: 0, kind: input, shape index: {}]   ;;  %s23_s1 = inlined_call_operand.vmem [shape: s32[2,8], index: 1, kind: output, shape index: {}]  }
   0x1   :  { %v4_v0 = vld [vmem:[%s22_s0] ss:$0 sm:$0xff] }
   0x2   :  { %5 = vst [vmem:[%s23_s1] sm:$0x3] %v4_v0 }

// kernel: tile.0
= control target key start
LH: loop header
LB: loop body
LE: loop exit
PB: predicated region body
PF: predicated region fallthrough
CT: control target
= control target key end

     0   :  { %s66_s8 = smov 125   ;;  %vm7_vm0 = vcmask 7168   ;;  %s67_s11 = smov 126   ;;  %s117_s0 = inlined_call_operand.vmem [shape: s32[2,8], index: 0, kind: input, shape index: {}]   ;;  %s118_s1 = inlined_call_operand.vmem [shape: s32[16,1], index: 1, kind: output, shape index: {}]  }
   0x1   :  { %v4_v0 = vld [vmem:[%s117_s0] sm:$0x3]  ;;  %s65_s0 = smov 127   ;;  %s68_s12 = smov 124  }
   0x2   :  { %5 = vst [vmem:[#allocation0] sm:$0x3] %v4_v0  ;;  %s69_s13 = smov 123   ;;  %s70_s14 = smov 122  }
   0x3   :  { %s71_s15 = smov 121  }
   0x9   :  { %v9_v1 = vld [vmem:[#allocation0] sm:$0x3]  }
   0xa   :  { %v21_v2 = vld [vmem:[#allocation0] sm:$0x3]   ;;  %10 = vrot.lane.b32.xlu0 %v9_v1, %s65_s0 }
   0xb   :  { %22 = vrot.lane.b32.xlu1 %v21_v2, %s66_s8  ;;  %v15_v3 = vld [vmem:[#allocation0] sm:$0x3]  }
   0xc   :  { %v27_v4 = vld [vmem:[#allocation0] sm:$0x3]  }
   0xd   :  { %v6_v5 = vld [vmem:[#allocation0] sm:$0x3]  }
   0xe   :  { %8 = vst.msk [vmem:[%s118_s1] ss:$8 sm:$0x3] %vm7_vm0, %v6_v5   ;;  %16 = vrot.lane.b32.xlu0 %v15_v3, %s67_s11  ;;  %v33_v6 = vld [vmem:[#allocation0] sm:$0x3]  }
   0xf   :  { %28 = vrot.lane.b32.xlu1 %v27_v4, %s68_s12  ;;  %v39_v7 = vld [vmem:[#allocation0] sm:$0x3]  }
  0x10   :  { %v45_v8 = vld [vmem:[#allocation0] sm:$0x3]  }
  0x12   :  { %34 = vrot.lane.b32.xlu0 %v33_v6, %s69_s13 }
  0x13   :  { %40 = vrot.lane.b32.xlu1 %v39_v7, %s70_s14 }
  0x16   :  { %46 = vrot.lane.b32.xlu0 %v45_v8, %s71_s15 }
  0x7c   :  { %v11_v9 = vpop.permute.xlu0 %10  }
  0x7d   :  { %v23_v10 = vpop.permute.xlu1 %22   ;;  %51 = vst.msk [vmem:[%s118_s1 + $0x1] ss:$8 sm:$0x3] %vm7_vm0, %v11_v9  }
  0x7e   :  { %53 = vst.msk [vmem:[%s118_s1 + $0x3] ss:$8 sm:$0x3] %vm7_vm0, %v23_v10  }
  0x80   :  { %v17_v11 = vpop.permute.xlu0 %16  }
  0x81   :  { %v29_v12 = vpop.permute.xlu1 %28   ;;  %52 = vst.msk [vmem:[%s118_s1 + $0x2] ss:$8 sm:$0x3] %vm7_vm0, %v17_v11  }
  0x82   :  { %54 = vst.msk [vmem:[%s118_s1 + $0x4] ss:$8 sm:$0x3] %vm7_vm0, %v29_v12  }
  0x84   :  { %v35_v13 = vpop.permute.xlu0 %34  }
  0x85   :  { %v41_v14 = vpop.permute.xlu1 %40   ;;  %55 = vst.msk [vmem:[%s118_s1 + $0x5] ss:$8 sm:$0x3] %vm7_vm0, %v35_v13  }
  0x86   :  { %56 = vst.msk [vmem:[%s118_s1 + $0x6] ss:$8 sm:$0x3] %vm7_vm0, %v41_v14  }
  0x88   :  { %v47_v15 = vpop.permute.xlu0 %46  }
  0x89   :  { %57 = vst.msk [vmem:[%s118_s1 + $0x7] ss:$8 sm:$0x3] %vm7_vm0, %v47_v15  }

// kernel: forward_fn.16
= control target key start
LH: loop header
LB: loop body
LE: loop exit
PB: predicated region body
PF: predicated region fallthrough
CT: control target
= control target key end

     0   :  { %vm16_vm0 = vcmask 261120   ;;  %v145_v0 = vmov 0.0   ;;  %vm146_vm1 = vmmov 0   ;;  %vm56_vm2 = vcmask 523264   ;;  %s192_s1 = inlined_call_operand.vmem [shape: bf16[64,32], index: 1, kind: input, shape index: {}]   ;;  %s193_s0 = inlined_call_operand.vmem [shape: f32[16,64], index: 0, kind: input, shape index: {}]   ;;  %s194_s2 = inlined_call_operand.vmem [shape: f32[16,32], index: 2, kind: output, shape index: {}]  }
   0x1   :  { %127 = vmatprep.subr.bf16.mxu0 %v145_v0  ;;  %v141_v1 = vld [vmem:[%s192_s1] sm:$0xff]   ;;  %135 = vmatprep.mubr.msk.bf16.mxu0 %vm146_vm1, %v145_v0  ;;  %17 = vst.msk [vmem:[#allocation2] sm:$0xff] %vm16_vm0, %v145_v0  ;;  %18 = vst.msk [vmem:[#allocation2 + $0x8] sm:$0xff] %vm16_vm0, %v145_v0  ;;  %v142_v2 = vld [vmem:[%s192_s1 + $0x8] sm:$0xff]  }
   0x2   :  { %128 = vmatpush3.bf16.msra.mxu0 %v141_v1  ;;  %v143_v3 = vld [vmem:[%s192_s1 + $0x10] sm:$0xff]   ;;  %v144_v4 = vld [vmem:[%s192_s1 + $0x18] sm:$0xff]   ;;  %v21_v5 = vld [vmem:[%s193_s0] sm:$0xff] }
   0x3   :  { %129 = vmatprep.subr.bf16.mxu0 %v145_v0  ;;  %v22_v6 = vld [vmem:[%s193_s0 + $0x8] sm:$0xff] }
   0x4   :  { %v23_v7 = vpack.c.bf16 %v22_v6, %v21_v5 }
   0x6   :  { %130 = vmatpush3.bf16.msra.mxu0 %v142_v2 }
   0x7   :  { %131 = vmatprep.subr.bf16.mxu0 %v145_v0 }
   0x8   :  { %v19_v8 = vld [vmem:[#allocation2] sm:$0xff]  ;;  %v20_v10 = vld [vmem:[#allocation2 + $0x8] sm:$0xff] }
   0xa   :  { %132 = vmatpush3.bf16.msra.mxu0 %v143_v3 }
   0xb   :  { %133 = vmatprep.subr.bf16.mxu0 %v145_v0 }
   0xe   :  { %134 = vmatpush3.bf16.msra.mxu0 %v144_v4 }
  0x11   :  { %136 = vmatmul.mubr.msk.bf16.vlgmr.msra.gmra.mrb[0].mxu0 %vm56_vm2, %v23_v7 }
  0xe4   :  { %v94_v9 = vpop.f32.mrb[0].mxu0 }
  0xe5   :  { %v101_v11 = vadd.f32 %v94_v9, %v19_v8  ;;  %v137_v12 = vpop.f32.mrb[1].mxu0 }
  0xe6   :  { %v97_v13 = vpop.f32.mrb[2].mxu0 }
  0xe7   :  { %104 = vst.msk [vmem:[#allocation2] sm:$0xff] %vm16_vm0, %v101_v11  ;;  %v102_v14 = vadd.f32 %v97_v13, %v20_v10  ;;  %v138_v15 = vpop.f32.mrb[3].mxu0 }
  0xe9   :  { %105 = vst.msk [vmem:[#allocation2 + $0x8] sm:$0xff] %vm16_vm0, %v102_v14 }
  0xee   :  { %v109_v16 = vld [vmem:[#allocation2] sm:$0xff] }
  0xef   :  { %111 = vst.msk [vmem:[%s194_s2] sm:$0xff] %vm16_vm0, %v109_v16 }
  0xf0   :  { %v110_v17 = vld [vmem:[#allocation2 + $0x8] sm:$0xff] }
  0xf1   :  { %112 = vst.msk [vmem:[%s194_s2 + $0x8] sm:$0xff] %vm16_vm0, %v110_v17 }

// kernel: forward_fn.17
= control target key start
LH: loop header
LB: loop body
LE: loop exit
PB: predicated region body
PF: predicated region fallthrough
CT: control target
= control target key end

     0   :  { %vm22_vm0 = vcmask 261120   ;;  %v45_v12 = vlaneseq  ;;  %s124_s0 = inlined_call_operand.vmem [shape: f32[16,32], index: 0, kind: input, shape index: {}]   ;;  %s125_s1 = inlined_call_operand.vmem [shape: f32[16,32], index: 1, kind: input, shape index: {}]   ;;  %s126_s3 = inlined_call_operand.vmem [shape: f32[16,32], index: 3, kind: output, shape index: {0}]   ;;  %s127_s2 = inlined_call_operand.vmem [shape: f32[1,32], index: 2, kind: input, shape index: {}]   ;;  %s128_s4 = inlined_call_operand.vmem [shape: f32[16,32], index: 4, kind: output, shape index: {1}]  }
   0x1   :  { %v16_v0 = vld [vmem:[%s124_s0] sm:$0xff]  ;;  %v17_v2 = vld [vmem:[%s124_s0 + $0x8] sm:$0xff] }
   0x2   :  { %v18_v1 = vld [vmem:[%s125_s1] sm:$0xff]  ;;  %v19_v4 = vld [vmem:[%s125_s1 + $0x8] sm:$0xff]  ;;  %v46_v16 = vshrl.u32 %v45_v12, 7 }
   0x3   :  { %v20_v3 = vadd.f32 %v18_v1, %v16_v0  ;;  %v21_v5 = vadd.f32 %v19_v4, %v17_v2  ;;  %v42_v17 = vld [vmem:[%s127_s2] sm:$0x1] }
   0x4   :  { %v43_v19 = vadd.f32 1.0, %v42_v17  ;;  %v47_v20 = vsub.s32 0, %v46_v16 }
   0x5   :  { %v25_v6 = vmul.f32 %v20_v3, %v20_v3  ;;  %23 = vst.msk [vmem:[%s126_s3] sm:$0xff] %vm22_vm0, %v20_v3  ;;  %24 = vst.msk [vmem:[%s126_s3 + $0x8] sm:$0xff] %vm22_vm0, %v21_v5  ;;  %v26_v7 = vmul.f32 %v21_v5, %v21_v5 }
   0x6   :  { %v48_v21 = vrot.slane %v43_v19, %v47_v20 }
   0x7   :  { %v27_v8 = vsel %vm22_vm0, %v25_v6, 0.0  ;;  %v30_v9 = vsel %vm22_vm0, %v26_v7, 0.0 }
   0x8   :  { %28 = vadd.xlane.f32.xlu0 %v27_v8 }
   0xc   :  { %31 = vadd.xlane.f32.xlu0 %v30_v9 }
  0x95   :  { %v29_v10 = vpop.xlane.xlu0 %28 }
  0x96   :  { %v34_v11 = vmul.f32 0.03125, %v29_v10 }
  0x98   :  { %v36_v13 = vadd.f32 1e-06, %v34_v11 }
  0x99   :  { %v32_v14 = vpop.xlane.xlu0 %31 }
  0x9a   :  { %62 = vrsqrt.f32 %v36_v13  ;;  %v35_v15 = vmul.f32 0.03125, %v32_v14 }
  0x9c   :  { %v37_v18 = vadd.f32 1e-06, %v35_v15 }
  0x9e   :  { %64 = vrsqrt.f32 %v37_v18 }
  0xa4   :  { %v63_v22 = vpop.eup %62 }
  0xa5   :  { %v40_v23 = vmul.f32 %v63_v22, %v20_v3 }
  0xa7   :  { %v50_v24 = vmul.f32 %v48_v21, %v40_v23 }
  0xa8   :  { %v65_v25 = vpop.eup %64 }
  0xa9   :  { %52 = vst.msk [vmem:[%s128_s4] sm:$0xff] %vm22_vm0, %v50_v24  ;;  %v41_v26 = vmul.f32 %v65_v25, %v21_v5 }
  0xab   :  { %v51_v27 = vmul.f32 %v48_v21, %v41_v26 }
  0xad   :  { %53 = vst.msk [vmem:[%s128_s4 + $0x8] sm:$0xff] %vm22_vm0, %v51_v27 }

// kernel: forward_fn.15
= control target key start
LH: loop header
LB: loop body
LE: loop exit
PB: predicated region body
PF: predicated region fallthrough
CT: control target
= control target key end

     0   :  { %s988_s20 = smov 0   ;;  %s990_s21 = smov 0   ;;  %s1084_s0 = inlined_call_operand.<no memory space> [shape: s32[1], index: 0, kind: input, shape index: {}]   ;;  %s1085_s1 = inlined_call_operand.vmem [shape: f32[2,2,16,16], index: 1, kind: input, shape index: {}]   ;;  %s1086_s2 = inlined_call_operand.vmem [shape: f32[2,2,16,16], index: 2, kind: input, shape index: {}]   ;;  %s1087_s3 = inlined_call_operand.vmem [shape: f32[2,2,16,16], index: 3, kind: input, shape index: {}]   ;;  %s1088_s4 = inlined_call_operand.vmem [shape: s32[16,1], index: 4, kind: input, shape index: {}]   ;;  %s1089_s5 = inlined_call_operand.vmem [shape: f32[2,2,16,16], index: 5, kind: output, shape index: {}]  }
   0x1   :  { %10 = sst [smem:[#allocation6]] %s1084_s0  ;;  %s992_s22 = smov 0  }
   0x2   :  { %s994_s23 = smov 0   ;;  %s996_s24 = smov 0  }
   0x3 LB: > { %s38_s0 = sadd.s32 1, %s939_s22  ;;  %s42_s25 = sadd.s32 1, %s943_s23  ;;  %s947_s24 = sphi %s996_s24, %s16_s24   ;;  %s943_s23 = sphi %s994_s23, %s1093_s23   ;;  %s939_s22 = sphi %s992_s22, %s1092_s22   ;;  %s935_s21 = sphi %s990_s21, %s1091_s21   ;;  %s931_s20 = sphi %s988_s20, %s1090_s20  }
   0x4   : > { %p40_p0 = scmp.ge.s32.totalorder %s38_s0, 2  ;;  %p813_p1 = scmp.ge.s32.totalorder %s947_s24, 1 }
   0x5   : > { %p264_p2 = scmp.lt.s32.totalorder %s947_s24, 5 }
   0x6   : > { %s1095_s0 = smov (%p40_p0, %s38_s0), 0  ;;  %s1097_s25 = smov (!%p40_p0, %s42_s25), %s943_s23 }
   0x7   : > { %p265_p3 = pnand %p813_p1, %p264_p2  ;;  %p44_p4 = scmp.ge.s32.totalorder %s1097_s25, 2 }
   0x8   : > { %p338_p5 = scmp.lt.s32.totalorder (!%p265_p3), %s935_s21, 1  ;;  %p340_p6 = scmp.lt.s32.totalorder (!%p265_p3), %s931_s20, 1  ;;  %vm404_vm0 = vcmask (!%p265_p3), 7168   ;;  %vm409_vm1 = vcmask (!%p265_p3), 130048   ;;  %v949_v0 = vmov (!%p265_p3), -inf   ;;  %v950_v1 = vmov (!%p265_p3), 0.0  }
   0x9   : > { %s1099_s25 = smov (%p44_p4, %s1097_s25), 0  ;;  %268 = sbr.rel (%p265_p3) target bundleno = 903 (0x387), region = 36 }
   0xa   : > { %405 = vst.msk [vmem:[#allocation2] sm:$0xff] (!%p265_p3), %vm404_vm0, %v949_v0  ;;  %406 = vst.msk [vmem:[#allocation2 + $0x8] sm:$0xff] (!%p265_p3), %vm404_vm0, %v949_v0  ;;  %s413_s26 = sld [smem:[#allocation6]] (!%p265_p3) }
   0xb   : > { %407 = vst.msk [vmem:[#allocation3] sm:$0xff] (!%p265_p3), %vm404_vm0, %v950_v1  ;;  %408 = vst.msk [vmem:[#allocation3 + $0x8] sm:$0xff] (!%p265_p3), %vm404_vm0, %v950_v1 }
   0xc   : > { %410 = vst.msk [vmem:[#allocation4] sm:$0xff] (!%p265_p3), %vm409_vm1, %v950_v1  ;;  %411 = vst.msk [vmem:[#allocation4 + $0x8] sm:$0xff] (!%p265_p3), %vm409_vm1, %v950_v1 }
  0x10   : > { %s1101_s21 = smov (!%p338_p5, %s935_s21), 1  ;;  %s1103_s20 = smov (!%p340_p6, %s931_s20), 1 }
  0x11   : > { %s815_s27 = sshll.u32 %s1101_s21, 2  ;;  %s814_s28 = sshll.u32 %s1103_s20, 1 }
  0x12   : > { %s347_s29 = sadd.s32 %s815_s27, %s814_s28  ;;  %p827_p7 = scmp.lt.s32.totalorder %s413_s26, 0 }
  0x13   : > { %s816_s30 = sshll.u32 %s347_s29, 3  ;;  %v951_v4 = vmov (!%p827_p7), 0.0   ;;  %vm952_vm2 = vmmov (!%p827_p7), 0   ;;  %v476_v6 = vld [vmem:[%s1088_s4] sm:$0xff] (!%p827_p7)  ;;  %v953_v7 = vmov (!%p827_p7), 0   ;;  %v477_v11 = vld [vmem:[%s1088_s4 + $0x8] sm:$0xff] (!%p827_p7)  ;;  %v472_v13 = vlaneseq (!%p827_p7) }
  0x14   : > { %s349_s8 = scalar_lea.vmem %s1085_s1, %s816_s30  ;;  %s363_s11 = scalar_lea.vmem %s1086_s2, %s816_s30  ;;  %836 = vmatprep.subr.bf16.mxu0 (!%p827_p7), %v951_v4  ;;  %838 = vmatprep.mubr.msk.bf16.mxu0 (!%p827_p7), %vm952_vm2, %v951_v4  ;;  %v488_v25 = vld [vmem:[#allocation2] sm:$0xff] (!%p827_p7)  ;;  %v489_v28 = vld [vmem:[#allocation2 + $0x8] sm:$0xff] (!%p827_p7)  ;;  %v520_v51 = vld [vmem:[#allocation3] sm:$0xff] (!%p827_p7) }
  0x15   : > { %s1037_s14 = scalar_lea.vmem %s1087_s3, %s816_s30  ;;  %s1042_s17 = scalar_lea.vmem %s1089_s5, %s816_s30  ;;  %v421_v2 = vld [vmem:[%s363_s11] sm:$0xff] (!%p827_p7)  ;;  %v422_v3 = vld [vmem:[%s363_s11 + $0x8] sm:$0xff] (!%p827_p7)  ;;  %894 = vset.pattern.permute.xlu0 (!%p827_p7), %v953_v7  ;;  %895 = vset.pattern.permute.xlu1 (!%p827_p7), %v953_v7  ;;  %v473_v15 = vand.u32 (!%p827_p7), 127, %v472_v13  ;;  %v521_v54 = vld [vmem:[#allocation3 + $0x8] sm:$0xff] (!%p827_p7) }
  0x16   : > { %417 = sbr.rel (%p827_p7) target bundleno = 756 (0x2f4), region = 44  ;;  %v423_v5 = vpack.c.bf16 (!%p827_p7), %v422_v3, %v421_v2  ;;  %479 = vperm.xlu0 (!%p827_p7), %894, %v476_v6   ;;  %842 = vmatprep.subr.bf16.mxu1 (!%p827_p7), %v951_v4  ;;  %v418_v9 = vld [vmem:[%s349_s8] sm:$0xff] (!%p827_p7)  ;;  %v419_v10 = vld [vmem:[%s349_s8 + $0x8] sm:$0xff] (!%p827_p7) }
  0x17   : > { %844 = vmatprep.mubr.msk.bf16.mxu1 (!%p827_p7), %vm952_vm2, %v951_v4  ;;  %v420_v12 = vpack.c.bf16 (!%p827_p7), %v419_v10, %v418_v9  ;;  %v550_v33 = vld [vmem:[%s1037_s14] sm:$0xff] (!%p827_p7)  ;;  %v551_v34 = vld [vmem:[%s1037_s14 + $0x8] sm:$0xff] (!%p827_p7) }
  0x18   : > { %v429_v8 = vsel (!%p827_p7), %vm409_vm1, %v423_v5, 0  ;;  %v552_v35 = vpack.c.bf16 (!%p827_p7), %v551_v34, %v550_v33  ;;  %v535_v59 = vld [vmem:[#allocation4] sm:$0xff] (!%p827_p7)  ;;  %v536_v61 = vld [vmem:[#allocation4 + $0x8] sm:$0xff] (!%p827_p7) }
  0x19   : > { %837 = vmatpush3.bf16.xpose.msra.mxu0 (!%p827_p7), %v429_v8 }
  0x1a   : > { %482 = vperm.xlu0 (!%p827_p7), %894, %v477_v11   ;;  %843 = vmatpush3.bf16.msra.mxu1 (!%p827_p7), %v552_v35 }
  0x20   : > { %839 = vmatmul.mubr.msk.bf16.vlgmr.msra.gmra.mrb[0].mxu0 %vm409_vm1, %v420_v12 }
  0x95   : > { %v480_v14 = vpop.permute.xlu0 %479 }
  0x96   : > { %vm484_vm3 = vcmp.le.s32.totalorder %v473_v15, %v480_v14 }
  0x99   : > { %v483_v16 = vpop.permute.xlu0 %482 }
  0x9a   : > { %vm485_vm4 = vcmp.le.s32.totalorder %v473_v15, %v483_v16 }
  0xf3   : > { %v465_v17 = vpop.f32.mrb[0].mxu0 }
  0xf4   : > { %v486_v18 = vsel %vm484_vm3, %v465_v17, -1e+30  ;;  %v840_v19 = vpop.f32.mrb[1].mxu0 }
  0xf5   : > { %v468_v20 = vpop.f32.mrb[2].mxu0  ;;  %v490_v21 = vsel %vm409_vm1, %v486_v18, -inf }
  0xf6   : > { %v487_v22 = vsel %vm485_vm4, %v468_v20, -1e+30  ;;  %491 = vmax.xlane.f32.xlu1 %v490_v21  ;;  %v841_v23 = vpop.f32.mrb[3].mxu0 }
  0xf7   : > { %v493_v24 = vsel %vm409_vm1, %v487_v22, -inf }
  0xfa   : > { %494 = vmax.xlane.f32.xlu1 %v493_v24 }
 0x183   : > { %v492_v26 = vpop.xlane.xlu1 %491 }
 0x184   : > { %v496_v27 = vmax.f32 %v488_v25, %v492_v26 }
 0x186   : > { %v498_v29 = vsub.f32 %v488_v25, %v496_v27  ;;  %601 = vst.msk [vmem:[#allocation2] sm:$0xff] %vm404_vm0, %v496_v27  ;;  %506 = vperm.xlu0 %894, %v496_v27  }
 0x187   : > { %v495_v30 = vpop.xlane.xlu1 %494 }
 0x188   : > { %v497_v31 = vmax.f32 %v489_v28, %v495_v30  ;;  %v500_v48 = vmul.f32 1.442695, %v498_v29 }
 0x18a   : > { %v499_v32 = vsub.f32 %v489_v28, %v497_v31  ;;  %602 = vst.msk [vmem:[#allocation2 + $0x8] sm:$0xff] %vm404_vm0, %v497_v31  ;;  %511 = vperm.xlu1 %895, %v497_v31  }
 0x18c   : > { %v502_v47 = vmul.f32 1.442695, %v499_v32 }
 0x205   : > { %v507_v36 = vpop.permute.xlu0 %506 }
 0x206   : > { %v514_v37 = vsub.f32 %v486_v18, %v507_v36 }
 0x208   : > { %v516_v38 = vmul.f32 1.442695, %v514_v37 }
 0x209   : > { %v512_v39 = vpop.permute.xlu1 %511 }
 0x20a   : > { %896 = vpow2.f32 %v516_v38  ;;  %v515_v40 = vsub.f32 %v487_v22, %v512_v39 }
 0x20c   : > { %v518_v41 = vmul.f32 1.442695, %v515_v40 }
 0x20e   : > { %898 = vpow2.f32 %v518_v41 }
 0x20f   : > { %900 = vpow2.f32 %v502_v47 }
 0x210   : > { %902 = vpow2.f32 %v500_v48 }
 0x214   : > { %v897_v42 = vpop.eup %896 }
 0x215   : > { %v524_v43 = vsel %vm409_vm1, %v897_v42, 0.0 }
 0x216   : > { %525 = vadd.xlane.f32.xlu0 %v524_v43 }
 0x218   : > { %v899_v44 = vpop.eup %898 }
 0x219   : > { %v527_v45 = vsel %vm409_vm1, %v899_v44, 0.0  ;;  %v549_v46 = vpack.c.bf16 %v899_v44, %v897_v42  ;;  %v901_v49 = vpop.eup %900 }
 0x21a   : > { %528 = vadd.xlane.f32.xlu1 %v527_v45  ;;  %v903_v50 = vpop.eup %902  ;;  %v523_v56 = vmul.f32 %v901_v49, %v521_v54 }
 0x21b   : > { %845 = vmatmul.mubr.msk.bf16.vlgmr.msra.gmra.mrb[0].mxu1 %vm409_vm1, %v549_v46  ;;  %v522_v52 = vmul.f32 %v903_v50, %v520_v51 }
 0x22b   : > { %544 = vperm.xlu1 %895, %v901_v49  }
 0x22c   : > { %539 = vperm.xlu0 %894, %v903_v50  }
 0x2a3   : > { %v526_v53 = vpop.xlane.xlu0 %525 }
 0x2a4   : > { %v530_v55 = vadd.f32 %v526_v53, %v522_v52 }
 0x2a6   : > { %533 = vst.msk [vmem:[#allocation3] sm:$0xff] %vm404_vm0, %v530_v55 }
 0x2a7   : > { %v529_v57 = vpop.xlane.xlu1 %528 }
 0x2a8   : > { %v531_v58 = vadd.f32 %v529_v57, %v523_v56 }
 0x2aa   : > { %534 = vst.msk [vmem:[#allocation3 + $0x8] sm:$0xff] %vm404_vm0, %v531_v58 }
 0x2ab   : > { %v540_v60 = vpop.permute.xlu0 %539  ;;  %v545_v62 = vpop.permute.xlu1 %544 }
 0x2ac   : > { %v547_v63 = vmul.f32 %v540_v60, %v535_v59  ;;  %v548_v1 = vmul.f32 %v545_v62, %v536_v61 }
 0x2ee   : > { %v590_v0 = vpop.f32.mrb[0].mxu1 }
 0x2ef   : > { %v597_v2 = vadd.f32 %v590_v0, %v547_v63  ;;  %v846_v3 = vpop.f32.mrb[1].mxu1 }
 0x2f0   : > { %v593_v4 = vpop.f32.mrb[2].mxu1 }
 0x2f1   : > { %599 = vst.msk [vmem:[#allocation4] sm:$0xff] %vm409_vm1, %v597_v2  ;;  %v598_v5 = vadd.f32 %v593_v4, %v548_v1  ;;  %v847_v6 = vpop.f32.mrb[3].mxu1 }
 0x2f3   : > { %600 = vst.msk [vmem:[#allocation4 + $0x8] sm:$0xff] %vm409_vm1, %v598_v5 }
 0x2f4 PF: > { %v608_v7 = vld [vmem:[#allocation3] sm:$0xff]  ;;  %v609_v8 = vld [vmem:[#allocation3 + $0x8] sm:$0xff]  ;;  %v954_v9 = vmov 0  }
 0x2f5   : > { %904 = vset.pattern.permute.xlu0 %v954_v9  ;;  %905 = vrcp.f32 %v608_v7 }
 0x2f6   : > { %907 = vrcp.f32 %v609_v8 }
 0x2f8   : > { %v606_v12 = vld [vmem:[#allocation4] sm:$0xff] }
 0x2fa   : > { %v607_v15 = vld [vmem:[#allocation4 + $0x8] sm:$0xff] }
 0x2ff   : > { %v906_v10 = vpop.eup %905 }
 0x300   : > { %614 = vperm.xlu0 %904, %v906_v10   ;;  %v908_v11 = vpop.eup %907 }
 0x304   : > { %619 = vperm.xlu0 %904, %v908_v11  }
 0x37f   : > { %v615_v13 = vpop.permute.xlu0 %614 }
 0x380   : > { %v622_v14 = vmul.f32 %v615_v13, %v606_v12 }
 0x382   : > { %625 = vst.msk [vmem:[%s1042_s17] sm:$0xff] %vm409_vm1, %v622_v14 }
 0x383   : > { %v620_v16 = vpop.permute.xlu0 %619 }
 0x384   : > { %v623_v17 = vmul.f32 %v620_v16, %v607_v15 }
 0x386   : > { %626 = vst.msk [vmem:[%s1042_s17 + $0x8] sm:$0xff] %vm409_vm1, %v623_v17 }
 0x387 PF: > { %s16_s24 = sadd.s32 1, %s947_s24   ;;  %s1090_s20 = smov %s939_s22 }
 0x388   : > { %p13_p8 = scmp.ge.s32.totalorder %s16_s24, 6   ;;  %s1091_s21 = smov %s943_s23 }
 0x389   : > { %s1092_s22 = smov %s1095_s0  ;;  %s1093_s23 = smov %s1099_s25 }
 0x38a   :  { %15 = sbr.rel (!%p13_p8) target bundleno = 3 (0x3), region = 87 }

// kernel: forward_fn.18
= control target key start
LH: loop header
LB: loop body
LE: loop exit
PB: predicated region body
PF: predicated region fallthrough
CT: control target
= control target key end

     0   :  { %vm22_vm0 = vcmask 261120   ;;  %v363_v0 = vmov 0.0   ;;  %vm364_vm1 = vmmov 0   ;;  %vm235_vm4 = vcmask 523264   ;;  %s437_s1 = inlined_call_operand.vmem [shape: bf16[32,64], index: 1, kind: input, shape index: {}]   ;;  %s438_s0 = inlined_call_operand.vmem [shape: f32[16,32], index: 0, kind: input, shape index: {}]   ;;  %s439_s2 = inlined_call_operand.vmem [shape: bf16[32,64], index: 2, kind: input, shape index: {}]   ;;  %s440_s3 = inlined_call_operand.vmem [shape: bf16[64,32], index: 3, kind: input, shape index: {}]   ;;  %s441_s4 = inlined_call_operand.vmem [shape: f32[16,32], index: 4, kind: output, shape index: {}]  }
   0x1   :  { %317 = vmatprep.subr.bf16.mxu1 %v363_v0  ;;  %v347_v1 = vld [vmem:[%s437_s1] sm:$0xff]   ;;  %321 = vmatprep.mubr.msk.bf16.mxu1 %vm364_vm1, %v363_v0  ;;  %23 = vst.msk [vmem:[#allocation2] sm:$0xff] %vm22_vm0, %v363_v0  ;;  %24 = vst.msk [vmem:[#allocation2 + $0x8] sm:$0xff] %vm22_vm0, %v363_v0  ;;  %v348_v2 = vld [vmem:[%s437_s1 + $0x8] sm:$0xff]  }
   0x2   :  { %333 = vmatprep.subr.bf16.mxu0 %v363_v0  ;;  %341 = vmatprep.mubr.msk.bf16.mxu0 %vm364_vm1, %v363_v0  ;;  %v25_v3 = vld [vmem:[%s438_s0] sm:$0xff]  ;;  %v26_v4 = vld [vmem:[%s438_s0 + $0x8] sm:$0xff]  ;;  %v353_v10 = vld [vmem:[%s440_s3 + $0x10] sm:$0xff]  }
   0x3   :  { %318 = vmatpush3.bf16.msra.mxu1 %v347_v1  ;;  %v27_v5 = vpack.c.bf16 %v26_v4, %v25_v3  ;;  %v349_v6 = vld [vmem:[%s439_s2] sm:$0xff]   ;;  %v350_v7 = vld [vmem:[%s439_s2 + $0x8] sm:$0xff]   ;;  %v354_v11 = vld [vmem:[%s440_s3 + $0x18] sm:$0xff]  }
   0x4   :  { %319 = vmatprep.subr.bf16.mxu1 %v363_v0  ;;  %v351_v8 = vld [vmem:[%s440_s3] sm:$0xff]   ;;  %v352_v9 = vld [vmem:[%s440_s3 + $0x8] sm:$0xff]  }
   0x5   :  { %334 = vmatpush3.bf16.msra.mxu0 %v351_v8 }
   0x6   :  { %335 = vmatprep.subr.bf16.mxu0 %v363_v0 }
   0x7   :  { %320 = vmatpush3.bf16.msra.mxu1 %v348_v2 }
   0x8   :  { %325 = vmatprep.subr.bf16.mxu1 %v363_v0 }
   0x9   :  { %336 = vmatpush3.bf16.msra.mxu0 %v352_v9  ;;  %v200_v9 = vld [vmem:[#allocation2] sm:$0xff] }
   0xa   :  { %322 = vmatmul.mubr.msk.bf16.vlgmr.msra.gmra.mrb[0].mxu1 %vm22_vm0, %v27_v5  ;;  %337 = vmatprep.subr.bf16.mxu0 %v363_v0 }
   0xb   :  { %326 = vmatpush3.bf16.msra.mxu1 %v349_v6  ;;  %329 = vmatprep.mubr.msk.bf16.mxu1 %vm364_vm1, %v363_v0 }
   0xc   :  { %327 = vmatprep.subr.bf16.mxu1 %v363_v0 }
   0xd   :  { %338 = vmatpush3.bf16.msra.mxu0 %v353_v10 }
   0xe   :  { %339 = vmatprep.subr.bf16.mxu0 %v363_v0 }
   0xf   :  { %328 = vmatpush3.bf16.msra.mxu1 %v350_v7 }
  0x11   :  { %340 = vmatpush3.bf16.msra.mxu0 %v354_v11  ;;  %v201_v11 = vld [vmem:[#allocation2 + $0x8] sm:$0xff] }
  0x12   :  { %330 = vmatmul.mubr.msk.bf16.vlgmr.msra.gmra.mrb[4].mxu1 %vm22_vm0, %v27_v5 }
  0xdd   :  { %v82_v12 = vpop.f32.mrb[0].mxu1 }
  0xde   :  { %v148_v13 = vmul.f32 0.70710677, %v82_v12  ;;  %v323_v14 = vpop.f32.mrb[1].mxu1  ;;  %v146_v62 = vmul.f32 0.5, %v82_v12 }
  0xdf   :  { %v85_v15 = vpop.f32.mrb[2].mxu1 }
  0xe0   :  { %v150_v16 = vand.u32 2147483647, %v148_v13  ;;  %v149_v17 = vmul.f32 0.70710677, %v85_v15  ;;  %v324_v18 = vpop.f32.mrb[3].mxu1  ;;  %vm188_vm2 = vcmp.ge.f32.partialorder %v148_v13, 0.0 }
  0xe1   :  { %v147_v3 = vmul.f32 0.5, %v85_v15 }
  0xe2   :  { %v152_v19 = vmul.f32 0.3275911, %v150_v16  ;;  %v151_v20 = vand.u32 2147483647, %v149_v17  ;;  %v176_v28 = vsub.f32 0.0, %v150_v16  ;;  %vm189_vm3 = vcmp.ge.f32.partialorder %v149_v17, 0.0 }
  0xe4   :  { %v154_v21 = vadd.f32 1.0, %v152_v19  ;;  %v153_v22 = vmul.f32 0.3275911, %v151_v20  ;;  %v177_v29 = vsub.f32 0.0, %v151_v20  ;;  %v178_v31 = vmul.f32 %v176_v28, %v150_v16 }
  0xe5   :  { %v139_v23 = vpop.f32.mrb[4].mxu1 }
  0xe6   :  { %355 = vrcp.f32 %v154_v21  ;;  %v155_v24 = vadd.f32 1.0, %v153_v22  ;;  %v331_v25 = vpop.f32.mrb[5].mxu1  ;;  %v179_v34 = vmul.f32 %v177_v29, %v151_v20  ;;  %v180_v36 = vmul.f32 1.442695, %v178_v31 }
  0xe7   :  { %v142_v26 = vpop.f32.mrb[6].mxu1 }
  0xe8   :  { %v332_v27 = vpop.f32.mrb[7].mxu1  ;;  %357 = vrcp.f32 %v155_v24  ;;  %v182_v40 = vmul.f32 1.442695, %v179_v34 }
  0xe9   :  { %359 = vpow2.f32 %v180_v36 }
  0xea   :  { %361 = vpow2.f32 %v182_v40 }
  0xf0   :  { %v356_v30 = vpop.eup %355 }
  0xf1   :  { %v158_v32 = vmul.f32 1.0614054, %v356_v30 }
  0xf2   :  { %v358_v33 = vpop.eup %357 }
  0xf3   :  { %v160_v35 = vadd.f32 -1.4531521, %v158_v32  ;;  %v159_v37 = vmul.f32 1.0614054, %v358_v33  ;;  %v360_v52 = vpop.eup %359 }
  0xf4   :  { %v362_v56 = vpop.eup %361 }
  0xf5   :  { %v162_v38 = vmul.f32 %v356_v30, %v160_v35  ;;  %v161_v39 = vadd.f32 -1.4531521, %v159_v37 }
  0xf7   :  { %v164_v41 = vadd.f32 1.4214138, %v162_v38  ;;  %v163_v42 = vmul.f32 %v358_v33, %v161_v39 }
  0xf9   :  { %v166_v43 = vmul.f32 %v356_v30, %v164_v41  ;;  %v165_v44 = vadd.f32 1.4214138, %v163_v42 }
  0xfb   :  { %v168_v45 = vadd.f32 -0.28449672, %v166_v43  ;;  %v167_v46 = vmul.f32 %v358_v33, %v165_v44 }
  0xfd   :  { %v170_v47 = vmul.f32 %v356_v30, %v168_v45  ;;  %v169_v48 = vadd.f32 -0.28449672, %v167_v46 }
  0xff   :  { %v172_v49 = vadd.f32 0.2548296, %v170_v47  ;;  %v171_v50 = vmul.f32 %v358_v33, %v169_v48 }
 0x101   :  { %v174_v51 = vmul.f32 %v356_v30, %v172_v49  ;;  %v173_v53 = vadd.f32 0.2548296, %v171_v50 }
 0x103   :  { %v184_v54 = vmul.f32 %v360_v52, %v174_v51  ;;  %v175_v55 = vmul.f32 %v358_v33, %v173_v53 }
 0x105   :  { %v186_v57 = vsub.f32 1.0, %v184_v54  ;;  %v185_v58 = vmul.f32 %v362_v56, %v175_v55 }
 0x107   :  { %v190_v59 = vsub.f32 0.0, %v186_v57  ;;  %v187_v60 = vsub.f32 1.0, %v185_v58 }
 0x109   :  { %v192_v61 = vsel %vm188_vm2, %v186_v57, %v190_v59  ;;  %v191_v0 = vsub.f32 0.0, %v187_v60 }
 0x10a   :  { %v194_v63 = vadd.f32 1.0, %v192_v61 }
 0x10b   :  { %v193_v2 = vsel %vm189_vm3, %v187_v60, %v191_v0 }
 0x10c   :  { %v196_v1 = vmul.f32 %v194_v63, %v146_v62  ;;  %v195_v4 = vadd.f32 1.0, %v193_v2 }
 0x10e   :  { %v198_v5 = vmul.f32 %v196_v1, %v139_v23  ;;  %v197_v6 = vmul.f32 %v195_v4, %v147_v3 }
 0x110   :  { %v199_v7 = vmul.f32 %v197_v6, %v142_v26 }
 0x112   :  { %v202_v8 = vpack.c.bf16 %v199_v7, %v198_v5 }
 0x114   :  { %342 = vmatmul.mubr.msk.bf16.vlgmr.msra.gmra.mrb[0].mxu0 %vm235_vm4, %v202_v8 }
 0x1e7   :  { %v273_v10 = vpop.f32.mrb[0].mxu0 }
 0x1e8   :  { %v280_v13 = vadd.f32 %v273_v10, %v200_v9  ;;  %v343_v14 = vpop.f32.mrb[1].mxu0 }
 0x1e9   :  { %v276_v16 = vpop.f32.mrb[2].mxu0 }
 0x1ea   :  { %282 = vst.msk [vmem:[#allocation2] sm:$0xff] %vm22_vm0, %v280_v13  ;;  %v281_v12 = vadd.f32 %v276_v16, %v201_v11  ;;  %v344_v17 = vpop.f32.mrb[3].mxu0 }
 0x1ec   :  { %283 = vst.msk [vmem:[#allocation2 + $0x8] sm:$0xff] %vm22_vm0, %v281_v12 }
 0x1f1   :  { %v287_v15 = vld [vmem:[#allocation2] sm:$0xff] }
 0x1f2   :  { %289 = vst.msk [vmem:[%s441_s4] sm:$0xff] %vm22_vm0, %v287_v15 }
 0x1f3   :  { %v288_v18 = vld [vmem:[#allocation2 + $0x8] sm:$0xff] }
 0x1f4   :  { %290 = vst.msk [vmem:[%s441_s4 + $0x8] sm:$0xff] %vm22_vm0, %v288_v18 }

// kernel: forward_fn.25
= control target key start
LH: loop header
LB: loop body
LE: loop exit
PB: predicated region body
PF: predicated region fallthrough
CT: control target
= control target key end

     0   :  { %10 = vsyncpa [#allocation3], 0  ;;  %s224_s0 = inlined_call_operand.vmem [shape: f32[16,32], index: 0, kind: input, shape index: {}]   ;;  %s225_s1 = inlined_call_operand.vmem [shape: f32[16,32], index: 1, kind: input, shape index: {}]   ;;  %s226_s2 = inlined_call_operand.vmem [shape: f32[1,32], index: 2, kind: input, shape index: {}]   ;;  %s227_s3 = inlined_call_operand.hbm [shape: f32[16,32], index: 3, kind: output, shape index: {0}]   ;;  %s228_s4 = inlined_call_operand.hbm [shape: f32[16,32], index: 4, kind: output, shape index: {1}]  }
   0x1   :  { %v18_v0 = vld [vmem:[%s224_s0] sm:$0xff]  ;;  %v19_v2 = vld [vmem:[%s224_s0 + $0x8] sm:$0xff] }
   0x2   :  { %v20_v1 = vld [vmem:[%s225_s1] sm:$0xff]  ;;  %v21_v4 = vld [vmem:[%s225_s1 + $0x8] sm:$0xff] }
   0x3   :  { %v22_v3 = vadd.f32 %v20_v1, %v18_v0 }
   0x4   :  { %11 = vsyncpa [#allocation5], 0  ;;  %vm24_vm0 = vcmask 261120   ;;  %v23_v5 = vadd.f32 %v21_v4, %v19_v2  ;;  %s144_s0 = smov [#allocation2]  }
   0x5   :  { %v27_v6 = vmul.f32 %v22_v3, %v22_v3  ;;  %25 = vst.msk [vmem:[#allocation2] sm:$0xff] %vm24_vm0, %v22_v3  ;;  %s61_s23 = sshll.u32 %s144_s0, 4  ;;  %s62_s23 = int_to_ptr.vmem [resolvable:$true] %s61_s23 }
   0x6   :  { %v28_v7 = vmul.f32 %v23_v5, %v23_v5  ;;  %26 = vst.msk [vmem:[#allocation2 + $0x8] sm:$0xff] %vm24_vm0, %v23_v5  ;;  %s96_s24 = scalar_lea.vmem %s62_s23, 256  ;;  %p101_p1 = scmp.lt.s32.totalorder %s62_s23, %s62_s23 }
   0x7   :  { %v29_v8 = vsel %vm24_vm0, %v27_v6, 0.0  ;;  %p97_p0 = scmp.ne.s32.totalorder %s62_s23, %s96_s24  ;;  %p102_p2 = scmp.lt.s32.totalorder %s96_s24, %s96_s24 }
   0x8   :  { %30 = vadd.xlane.f32.xlu0 %v29_v8  ;;  %v32_v9 = vsel %vm24_vm0, %v28_v7, 0.0 }
   0x9   :  { %p103_p3 = por %p102_p2, %p101_p1 }
   0xb   :  { %p104_p4 = pnand %p103_p3, %p97_p0 }
   0xc   :  { %33 = vadd.xlane.f32.xlu0 %v32_v9 }
   0xd   :  { %107 = shalt.err (!%p104_p4)
}
   0xe   :  { %s108_s26 = scalar_lea.hbm %s227_s3, 256 }
   0xf   :  { %p109_p5 = scmp.ne.s32.totalorder %s227_s3, %s108_s26  ;;  %p112_p6 = scmp.lt.u32.totalorder %s108_s26, %s227_s3 }
  0x11   :  { %p114_p7 = pnand %p112_p6, %p109_p5 }
  0x13   :  { %117 = shalt.err (!%p114_p7)
}
  0x14   :  { %s145_s5 = smov 128   ;;  %s146_s6 = smov 8   ;;  %v47_v12 = vlaneseq  ;;  %v44_v18 = vld [vmem:[%s226_s2] sm:$0x1] }
  0x15   :  { %67 = dma.vmem_to_hbm [thread:$0]  %s62_s23, 256, %s227_s3, [#allocation3], %s145_s5, %s145_s5, %s146_s6   ;;  %v45_v19 = vadd.f32 1.0, %v44_v18 }
  0x16   :  { %v48_v16 = vshrl.u32 %v47_v12, 7  ;;  %s147_s3 = smov [#allocation4]  }
  0x17   :  { %s73_s11 = sshll.u32 %s147_s3, 4  ;;  %s74_s11 = int_to_ptr.vmem [resolvable:$true] %s73_s11 }
  0x18   :  { %v49_v20 = vsub.s32 0, %v48_v16  ;;  %s118_s12 = scalar_lea.vmem %s74_s11, 256  ;;  %p123_p9 = scmp.lt.s32.totalorder %s74_s11, %s74_s11 }
  0x19   :  { %p119_p8 = scmp.ne.s32.totalorder %s74_s11, %s118_s12  ;;  %p124_p10 = scmp.lt.s32.totalorder %s118_s12, %s118_s12 }
  0x1a   :  { %v50_v21 = vrot.slane %v45_v19, %v49_v20 }
  0x1b   :  { %p125_p11 = por %p124_p10, %p123_p9 }
  0x1d   :  { %p126_p12 = pnand %p125_p11, %p119_p8 }
  0x95   :  { %v31_v10 = vpop.xlane.xlu0 %30 }
  0x96   :  { %v36_v11 = vmul.f32 0.03125, %v31_v10 }
  0x98   :  { %v38_v13 = vadd.f32 1e-06, %v36_v11 }
  0x99   :  { %v34_v14 = vpop.xlane.xlu0 %33 }
  0x9a   :  { %92 = vrsqrt.f32 %v38_v13  ;;  %v37_v15 = vmul.f32 0.03125, %v34_v14 }
  0x9c   :  { %v39_v17 = vadd.f32 1e-06, %v37_v15 }
  0x9e   :  { %94 = vrsqrt.f32 %v39_v17 }
  0xa4   :  { %v93_v22 = vpop.eup %92 }
  0xa5   :  { %v42_v23 = vmul.f32 %v93_v22, %v22_v3 }
  0xa7   :  { %v52_v24 = vmul.f32 %v50_v21, %v42_v23 }
  0xa8   :  { %v95_v25 = vpop.eup %94 }
  0xa9   :  { %v43_v26 = vmul.f32 %v95_v25, %v23_v5  ;;  %54 = vst.msk [vmem:[#allocation4] sm:$0xff] %vm24_vm0, %v52_v24 }
  0xab   :  { %v53_v27 = vmul.f32 %v50_v21, %v43_v26 }
  0xad   :  { %55 = vst.msk [vmem:[#allocation4 + $0x8] sm:$0xff] %vm24_vm0, %v53_v27 }
  0xae   :  { %129 = shalt.err (!%p126_p12)
}
  0xaf   :  { %s130_s14 = scalar_lea.hbm %s228_s4, 256 }
  0xb0   :  { %p131_p13 = scmp.ne.s32.totalorder %s228_s4, %s130_s14  ;;  %p134_p0 = scmp.lt.u32.totalorder %s130_s14, %s228_s4 }
  0xb2   :  { %p136_p1 = pnand %p134_p0, %p131_p13 }
  0xb4   :  { %139 = shalt.err (!%p136_p1)
}
  0xb5   :  { %79 = dma.vmem_to_hbm [thread:$0]  %s74_s11, 256, %s228_s4, [#allocation5], %s145_s5, %s145_s5, %s146_s6  }
  0xb6   :  { %140 = dma.done.wait [#allocation3], 256  }
  0xb7   :  { %141 = vsyncadd [#allocation3], 4294967040 }
  0xb8   :  { %142 = dma.done.wait [#allocation5], 256  }
  0xb9   :  { %143 = vsyncadd [#allocation5], 4294967040 }
  0xba   :  { %86 = vsyncpa [#allocation3], 1 }
  0xbb   :  { %87 = vsyncpa [#allocation5], 1 }

</bundles_post_ra>
